<compile_context>
chip_gen: v7x
topology: tpu7x:2x2x1
jax: 0.10.0
libtpu: 0.0.40
codegen_flags: <defaults>
</compile_context>

<pallas_src>
import jax
import jax.numpy as jnp
from jax.experimental import pallas as pl
from jax.experimental.pallas import tpu as pltpu

LANE = 128  # TPU lane width; all feature axes are zero-padded to this.


# --------------------------------------------------------------------------- #
# Fused kernel
# --------------------------------------------------------------------------- #
def _fused_graphsage_kernel(a_ref, invdeg_ref, yl1_ref, yr1_ref,
                            w2l_ref, w2r_ref, b2_ref, wlin_ref, blin_ref,
                            out_ref):
    """Whole forward pass for all N nodes (everything resident in VMEM).

    a_ref      : [N, N]    bf16  edge counts (exact integers): A[i, j] = #edges j->i
    invdeg_ref : [N, 1]    f32   1 / max(in-degree, 1)
    yl1_ref    : [N, 128]  bf16  X @ Wl1.T            (lane-padded)
    yr1_ref    : [N, 128]  f32   X @ Wr1.T + b1       (lane-padded, exact f32)
    w2l_ref    : [128,128] bf16  Wl2.T (padded)
    w2r_ref    : [128,128] bf16  Wr2.T (padded)
    b2_ref     : [1, 128]  f32
    wlin_ref   : [128,128] bf16  Wlin.T (padded)
    blin_ref   : [1, 128]  f32   blin on lanes 0..1, -1e30 on padded lanes
    out_ref    : [N, 128]  f32   log_softmax (valid in lanes 0..1)
    """
    a = a_ref[...]                       # bf16 counts
    inv_deg = invdeg_ref[...]            # f32 [N, 1]

    # ---- SAGEConv1 + ReLU    ((A @ X) @ Wl == A @ (X @ Wl), diag(1/deg) last)
    agg1 = jnp.dot(a, yl1_ref[...], preferred_element_type=jnp.float32)
    h1 = jnp.maximum(agg1 * inv_deg + yr1_ref[...], 0.0)
    # dropout(p=0.6) -> identity (eval mode)
    h1b = h1.astype(jnp.bfloat16)

    # ---- SAGEConv2 + ReLU
    h1wl2 = jnp.dot(h1b, w2l_ref[...], preferred_element_type=jnp.float32)
    agg2 = jnp.dot(a, h1wl2.astype(jnp.bfloat16),
                   preferred_element_type=jnp.float32)
    self2 = jnp.dot(h1b, w2r_ref[...], preferred_element_type=jnp.float32)
    h2 = jnp.maximum(agg2 * inv_deg + self2 + b2_ref[...], 0.0)
    # dropout(p=0.6) -> identity (eval mode)

    # ---- Linear head (lane-padded to 128) + log_softmax
    # Padded output lanes carry a -1e30 bias so exp() underflows to 0 and they
    # drop out of the softmax; the wrapper slices [:, :2] right away.
    logits = (jnp.dot(h2.astype(jnp.bfloat16), wlin_ref[...],
                      preferred_element_type=jnp.float32) + blin_ref[...])
    m = jnp.max(logits, axis=1, keepdims=True)
    z = logits - m
    lse = jnp.log(jnp.sum(jnp.exp(z), axis=1, keepdims=True))
    out_ref[...] = z - lse


# --------------------------------------------------------------------------- #
# Glue
# --------------------------------------------------------------------------- #
def build_edge_counts(edge_index, num_nodes):
    """counts[i, j] = number of edges j->i (duplicates counted, like PyG)."""
    src, dst = edge_index[0], edge_index[1]
    return jnp.zeros((num_nodes, num_nodes), jnp.float32).at[dst, src].add(1.0)


def _pad2(w, rows, cols):
    out = jnp.zeros((rows, cols), jnp.float32)
    return out.at[:w.shape[0], :w.shape[1]].set(w)


@jax.jit
def graphsage_forward(x, edge_index, params):
    N, in_feat = x.shape
    out_feat = params["wl1"].shape[0]
    assert in_feat <= LANE and out_feat <= LANE

    # Rough VMEM footprint (inputs + output + live h1/h2 intermediates).
    vmem_bytes = (2 * N * N                 # A bf16
                  + N * LANE * 2            # yl1 bf16
                  + N * LANE * 4            # yr1 f32
                  + N * 4                   # inv_deg
                  + 3 * LANE * LANE * 2     # weights bf16
                  + 2 * LANE * 4            # biases
                  + N * LANE * 4            # output f32
                  + 3 * N * LANE * 4)       # h1 / h2 / logits intermediates
    # TODO(synk): row-tiled two-phase grid + CSR neighbor gather for large N.
    assert vmem_bytes < 24 * 1024 * 1024, "graph too large for fused VMEM path"

    # --- one-time data prep (inside jit, so done once per compiled call) ---
    counts = build_edge_counts(edge_index, N)
    deg = counts.sum(axis=1, keepdims=True)
    inv_deg = 1.0 / jnp.maximum(deg, 1.0)                 # [N, 1] f32 (exact)
    A = counts.astype(jnp.bfloat16)                       # exact for counts<=256
    # TODO(synk): int8 counts on v5e/v6e, fp8 on v7x to halve A's HBM bytes.

    xp = _pad2(x, N, LANE)                                # f32, lane-padded
    wl1 = _pad2(params["wl1"].T, LANE, LANE)
    wr1 = _pad2(params["wr1"].T, LANE, LANE)
    b1 = _pad2(params["bl1"].reshape(1, -1), 1, LANE)
    yl1 = (xp @ wl1).astype(jnp.bfloat16)                 # X @ Wl1.T   [N,128]
    yr1 = xp @ wr1 + b1                                   # X @ Wr1.T+b [N,128] f32

    w2l = _pad2(params["wl2"].T, LANE, LANE).astype(jnp.bfloat16)
    w2r = _pad2(params["wr2"].T, LANE, LANE).astype(jnp.bfloat16)
    b2 = _pad2(params["bl2"].reshape(1, -1), 1, LANE)
    wlin = _pad2(params["wlin"].T, LANE, LANE).astype(jnp.bfloat16)
    blin = jnp.full((1, LANE), -1e30, jnp.float32).at[0, :2].set(params["blin"])

    flops = (4 * N * N * LANE               # two A @ [N,128] dots
             + 6 * N * LANE * LANE          # three [N,128]x[128,128] dots
             + 12 * N * LANE)               # elementwise
    trans = N * LANE + N                    # exp + log
    bytes_acc = (N * N * 2 + N * LANE * 2 + N * LANE * 4 + N * 4
                 + 3 * LANE * LANE * 2 + 2 * LANE * 4 + N * LANE * 4)

    out_pad = pl.pallas_call(
        _fused_graphsage_kernel,
        out_shape=jax.ShapeDtypeStruct((N, LANE), jnp.float32),
        compiler_params=pltpu.CompilerParams(
            vmem_limit_bytes=32 * 1024 * 1024),
        cost_estimate=pl.CostEstimate(
            flops=flops, transcendentals=trans, bytes_accessed=bytes_acc),
    )(A, inv_deg, yl1, yr1, w2l, w2r, b2, wlin, blin)

    return out_pad[:, :2]


# --------------------------------------------------------------------------- #
# Pure-JAX reference + params
# --------------------------------------------------------------------------- #
def graphsage_reference(x, edge_index, params):
    counts = build_edge_counts(edge_index, x.shape[0])
    A = counts / jnp.maximum(counts.sum(axis=1, keepdims=True), 1.0)

    def sage(h, wl, wr, bl):
        return (A @ h) @ wl.T + bl + h @ wr.T

    h1 = jax.nn.relu(sage(x, params["wl1"], params["wr1"], params["bl1"]))
    h2 = jax.nn.relu(sage(h1, params["wl2"], params["wr2"], params["bl2"]))
    logits = h2 @ params["wlin"].T + params["blin"]
    return jax.nn.log_softmax(logits, axis=1)


def init_params(key, in_feat, out_feat):
    ks = jax.random.split(key, 8)
    s1 = 1.0 / jnp.sqrt(in_feat)
    s2 = 1.0 / jnp.sqrt(out_feat)
    return {
        # SAGEConv1: lin_l (with bias) + lin_r (no bias), shapes [out, in]
        "wl1": jax.random.uniform(ks[0], (out_feat, in_feat), jnp.float32, -s1, s1),
        "wr1": jax.random.uniform(ks[1], (out_feat, in_feat), jnp.float32, -s1, s1),
        "bl1": jax.random.uniform(ks[2], (out_feat,), jnp.float32, -s1, s1),
        # SAGEConv2: [out, out]
        "wl2": jax.random.uniform(ks[3], (out_feat, out_feat), jnp.float32, -s2, s2),
        "wr2": jax.random.uniform(ks[4], (out_feat, out_feat), jnp.float32, -s2, s2),
        "bl2": jax.random.uniform(ks[5], (out_feat,), jnp.float32, -s2, s2),
        # Linear(out_feat, 2)
        "wlin": jax.random.uniform(ks[6], (2, out_feat), jnp.float32, -s2, s2),
        "blin": jax.random.uniform(ks[7], (2,), jnp.float32, -s2, s2),
    }


if __name__ == "__main__":
    key = jax.random.PRNGKey(0)
    k_x, k_e, k_p = jax.random.split(key, 3)

    N, in_feat, out_feat, E = 256, 16, 32, 1024

    x = jax.random.normal(k_x, (N, in_feat), jnp.float32)
    edge_index = jax.random.randint(k_e, (2, E), 0, N, jnp.int32)
    params = init_params(k_p, in_feat, out_feat)

    out = jax.block_until_ready(graphsage_forward(x, edge_index, params))

    assert out.shape == (N, 2)
    # log_softmax rows must exponentiate-sum to ~1
    assert bool(jnp.all(jnp.abs(jnp.sum(jnp.exp(out), axis=1) - 1.0) < 1e-4))
    # sanity vs f32 pure-JAX reference (loose tol: matmul operands are bf16)
    ref = graphsage_reference(x, edge_index, params)
    assert bool(jnp.max(jnp.abs(out - ref)) < 0.1), float(jnp.max(jnp.abs(out - ref)))
    print("KERNEL_OK")
</pallas_src>

<mosaic_0001>
module attributes {stable_mosaic.version = 11 : i64} {
  func.func private @main(%arg0: i32) attributes {dimension_semantics = [#tpu.dimension_semantics<core_parallel>], iteration_bounds = array<i64: 2>, tpu.core_type = #tpu.core_type<sc_scalar_subcore>, window_params = []} {
    return
  }
}

module attributes {stable_mosaic.version = 11 : i64} {
  func.func private @main(%arg0: i32) attributes {dimension_semantics = [#tpu.dimension_semantics<core_parallel>], iteration_bounds = array<i64: 2>, tpu.core_type = #tpu.core_type<sc_scalar_subcore>, window_params = []} {
    return
  }
}

module attributes {stable_mosaic.version = 11 : i64} {
  func.func @_fused_graphsage_kernel(%arg0: memref<256x256xbf16, #tpu.memory_space<vmem>>, %arg1: memref<256x1xf32, #tpu.memory_space<vmem>>, %arg2: memref<256x128xbf16, #tpu.memory_space<vmem>>, %arg3: memref<256x128xf32, #tpu.memory_space<vmem>>, %arg4: memref<128x128xbf16, #tpu.memory_space<vmem>>, %arg5: memref<128x128xbf16, #tpu.memory_space<vmem>>, %arg6: memref<1x128xf32, #tpu.memory_space<vmem>>, %arg7: memref<128x128xbf16, #tpu.memory_space<vmem>>, %arg8: memref<1x128xf32, #tpu.memory_space<vmem>>, %arg9: memref<256x128xf32, #tpu.memory_space<vmem>>) attributes {dimension_semantics = [], scalar_prefetch = 0 : i64, scratch_operands = 0 : i64, tpu.core_type = #tpu.core_type<tc>} {
    %c0 = arith.constant 0 : index
    %c0_0 = arith.constant 0 : index
    %0 = vector.load %arg0[%c0, %c0_0] : memref<256x256xbf16, #tpu.memory_space<vmem>>, vector<256x256xbf16>
    %c0_1 = arith.constant 0 : index
    %c0_2 = arith.constant 0 : index
    %1 = vector.load %arg1[%c0_1, %c0_2] : memref<256x1xf32, #tpu.memory_space<vmem>>, vector<256x1xf32>
    %c0_3 = arith.constant 0 : index
    %c0_4 = arith.constant 0 : index
    %2 = vector.load %arg2[%c0_3, %c0_4] : memref<256x128xbf16, #tpu.memory_space<vmem>>, vector<256x128xbf16>
    %cst = arith.constant dense<0.000000e+00> : vector<256x128xf32>
    %3 = tpu.matmul %0, %2, %cst {dimension_numbers = #tpu.dot_dimension_numbers<[1], [0], [0], [1], [0, 0, 1, 1], [], []>} : vector<256x256xbf16>, vector<256x128xbf16>, vector<256x128xf32> -> vector<256x128xf32>
    %4 = vector.broadcast %1 : vector<256x1xf32> to vector<256x128xf32>
    %5 = arith.mulf %3, %4 : vector<256x128xf32>
    %c0_5 = arith.constant 0 : index
    %c0_6 = arith.constant 0 : index
    %6 = vector.load %arg3[%c0_5, %c0_6] : memref<256x128xf32, #tpu.memory_space<vmem>>, vector<256x128xf32>
    %7 = arith.addf %5, %6 : vector<256x128xf32>
    %cst_7 = arith.constant 0.000000e+00 : f32
    %8 = vector.broadcast %cst_7 : f32 to vector<256x128xf32>
    %9 = arith.maximumf %7, %8 : vector<256x128xf32>
    %10 = arith.truncf %9 : vector<256x128xf32> to vector<256x128xbf16>
    %c0_8 = arith.constant 0 : index
    %c0_9 = arith.constant 0 : index
    %11 = vector.load %arg4[%c0_8, %c0_9] : memref<128x128xbf16, #tpu.memory_space<vmem>>, vector<128x128xbf16>
    %cst_10 = arith.constant dense<0.000000e+00> : vector<256x128xf32>
    %12 = tpu.matmul %10, %11, %cst_10 {dimension_numbers = #tpu.dot_dimension_numbers<[1], [0], [0], [1], [0, 0, 1, 1], [], []>} : vector<256x128xbf16>, vector<128x128xbf16>, vector<256x128xf32> -> vector<256x128xf32>
    %13 = arith.truncf %12 : vector<256x128xf32> to vector<256x128xbf16>
    %cst_11 = arith.constant dense<0.000000e+00> : vector<256x128xf32>
    %14 = tpu.matmul %0, %13, %cst_11 {dimension_numbers = #tpu.dot_dimension_numbers<[1], [0], [0], [1], [0, 0, 1, 1], [], []>} : vector<256x256xbf16>, vector<256x128xbf16>, vector<256x128xf32> -> vector<256x128xf32>
    %c0_12 = arith.constant 0 : index
    %c0_13 = arith.constant 0 : index
    %15 = vector.load %arg5[%c0_12, %c0_13] : memref<128x128xbf16, #tpu.memory_space<vmem>>, vector<128x128xbf16>
    %cst_14 = arith.constant dense<0.000000e+00> : vector<256x128xf32>
    %16 = tpu.matmul %10, %15, %cst_14 {dimension_numbers = #tpu.dot_dimension_numbers<[1], [0], [0], [1], [0, 0, 1, 1], [], []>} : vector<256x128xbf16>, vector<128x128xbf16>, vector<256x128xf32> -> vector<256x128xf32>
    %17 = vector.broadcast %1 : vector<256x1xf32> to vector<256x128xf32>
    %18 = arith.mulf %14, %17 : vector<256x128xf32>
    %19 = arith.addf %18, %16 : vector<256x128xf32>
    %c0_15 = arith.constant 0 : index
    %c0_16 = arith.constant 0 : index
    %20 = vector.load %arg6[%c0_15, %c0_16] : memref<1x128xf32, #tpu.memory_space<vmem>>, vector<1x128xf32>
    %21 = vector.broadcast %20 : vector<1x128xf32> to vector<256x128xf32>
    %22 = arith.addf %19, %21 : vector<256x128xf32>
    %cst_17 = arith.constant 0.000000e+00 : f32
    %23 = vector.broadcast %cst_17 : f32 to vector<256x128xf32>
    %24 = arith.maximumf %22, %23 : vector<256x128xf32>
    %25 = arith.truncf %24 : vector<256x128xf32> to vector<256x128xbf16>
    %c0_18 = arith.constant 0 : index
    %c0_19 = arith.constant 0 : index
    %26 = vector.load %arg7[%c0_18, %c0_19] : memref<128x128xbf16, #tpu.memory_space<vmem>>, vector<128x128xbf16>
    %cst_20 = arith.constant dense<0.000000e+00> : vector<256x128xf32>
    %27 = tpu.matmul %25, %26, %cst_20 {dimension_numbers = #tpu.dot_dimension_numbers<[1], [0], [0], [1], [0, 0, 1, 1], [], []>} : vector<256x128xbf16>, vector<128x128xbf16>, vector<256x128xf32> -> vector<256x128xf32>
    %c0_21 = arith.constant 0 : index
    %c0_22 = arith.constant 0 : index
    %28 = vector.load %arg8[%c0_21, %c0_22] : memref<1x128xf32, #tpu.memory_space<vmem>>, vector<1x128xf32>
    %29 = vector.broadcast %28 : vector<1x128xf32> to vector<256x128xf32>
    %30 = arith.addf %27, %29 : vector<256x128xf32>
    %cst_23 = arith.constant dense<0xFF800000> : vector<256xf32>
    %31 = vector.multi_reduction <maximumf>, %30, %cst_23 [1] : vector<256x128xf32> to vector<256xf32>
    %32 = vector.shape_cast %31 : vector<256xf32> to vector<256x1xf32>
    %33 = vector.broadcast %32 : vector<256x1xf32> to vector<256x128xf32>
    %34 = arith.subf %30, %33 : vector<256x128xf32>
    %35 = math.exp %34 : vector<256x128xf32>
    %cst_24 = arith.constant dense<0.000000e+00> : vector<256xf32>
    %36 = vector.multi_reduction <add>, %35, %cst_24 [1] : vector<256x128xf32> to vector<256xf32>
    %37 = vector.shape_cast %36 : vector<256xf32> to vector<256x1xf32>
    %38 = math.log %37 : vector<256x1xf32>
    %39 = vector.broadcast %38 : vector<256x1xf32> to vector<256x128xf32>
    %40 = arith.subf %34, %39 : vector<256x128xf32>
    %c0_25 = arith.constant 0 : index
    %c0_26 = arith.constant 0 : index
    %41 = vector.load %arg9[%c0_25, %c0_26] : memref<256x128xf32, #tpu.memory_space<vmem>>, vector<256x128xf32>
    tpu.vector_store %arg9[%c0_25, %c0_26], %40 {strides = array<i32>} : memref<256x128xf32, #tpu.memory_space<vmem>>, vector<256x128xf32>,
    return
  }
}

</mosaic_0001>

<bundles_post_ra>
// kernel: graphsage_forward.1
= control target key start
LH: loop header
LB: loop body
LE: loop exit
PB: predicated region body
PF: predicated region fallthrough
CT: control target
= control target key end

     0   :  { %v2986_v1 = vmov 0   ;;  %s4236_s2 = inlined_call_operand.vmem [shape: bf16[256,128], index: 2, kind: input, shape index: {}]   ;;  %s4237_s0 = inlined_call_operand.vmem [shape: bf16[256,256], index: 0, kind: input, shape index: {}]   ;;  %s4238_s1 = inlined_call_operand.vmem [shape: f32[256,1], index: 1, kind: input, shape index: {}]   ;;  %s4239_s4 = inlined_call_operand.vmem [shape: bf16[128,128], index: 4, kind: input, shape index: {}]   ;;  %s4240_s5 = inlined_call_operand.vmem [shape: bf16[128,128], index: 5, kind: input, shape index: {}]   ;;  %s4241_s3 = inlined_call_operand.vmem [shape: f32[256,128], index: 3, kind: input, shape index: {}]   ;;  %s4242_s7 = inlined_call_operand.vmem [shape: bf16[128,128], index: 7, kind: input, shape index: {}]   ;;  %s4243_s6 = inlined_call_operand.vmem [shape: f32[1,128], index: 6, kind: input, shape index: {}]   ;;  %s4244_s8 = inlined_call_operand.vmem [shape: f32[1,128], index: 8, kind: input, shape index: {}]   ;;  %s4245_s9 = inlined_call_operand.vmem [shape: f32[256,128], index: 9, kind: output, shape index: {}]  }
   0x1   :  { %v2749_v0 = vld [vmem:[%s4236_s2 + $0x40] sm:$0xff]   ;;  %2748 = vset.pattern.permute.xlu1 %v2986_v1  ;;  %2747 = vset.pattern.permute.xlu0 %v2986_v1  ;;  %v2751_v3 = vld [vmem:[%s4236_s2 + $0x48] sm:$0xff]   ;;  %v2753_v5 = vld [vmem:[%s4236_s2 + $0x50] sm:$0xff]  }
   0x2   :  { %v2750_v2 = vld [vmem:[%s4236_s2] sm:$0xff]   ;;  %2290 = vmatprep.subr.bf16.mxu0 %v2749_v0  ;;  %2730 = vmatprep.subr.bf16.mxu1 %v2749_v0  ;;  %v2752_v4 = vld [vmem:[%s4236_s2 + $0x8] sm:$0xff]   ;;  %v2754_v6 = vld [vmem:[%s4236_s2 + $0x10] sm:$0xff]  }
   0x3   :  { %2291 = vmatpush3.bf16.msra.mxu0 %v2750_v2  ;;  %2738 = vmatpush3.bf16.msra.mxu1 %v2750_v2  ;;  %v2755_v7 = vld [vmem:[%s4236_s2 + $0x58] sm:$0xff]   ;;  %v2757_v9 = vld [vmem:[%s4236_s2 + $0x60] sm:$0xff]   ;;  %v2759_v11 = vld [vmem:[%s4236_s2 + $0x68] sm:$0xff]  }
   0x4   :  { %2292 = vmatprep.subr.bf16.mxu0 %v2751_v3  ;;  %2731 = vmatprep.subr.bf16.mxu1 %v2751_v3  ;;  %v2756_v8 = vld [vmem:[%s4236_s2 + $0x18] sm:$0xff]   ;;  %v2758_v10 = vld [vmem:[%s4236_s2 + $0x20] sm:$0xff]   ;;  %v2760_v13 = vld [vmem:[%s4236_s2 + $0x28] sm:$0xff]  }
   0x5   :  { %v2767_v12 = vld [vmem:[%s4237_s0 + $0x4] ss:$8 sps:$4 sm:$0xff]   ;;  %v2761_v15 = vld [vmem:[%s4236_s2 + $0x70] sm:$0xff]   ;;  %v2763_v17 = vld [vmem:[%s4236_s2 + $0x78] sm:$0xff]  }
   0x6   :  { %v2773_v14 = vld [vmem:[%s4237_s0 + $0xc4] ss:$8 sps:$4 sm:$0xff]   ;;  %417 = vmatprep.mubr.bf16.mxu0 %v2767_v12  ;;  %v2762_v16 = vld [vmem:[%s4236_s2 + $0x30] sm:$0xff]   ;;  %v2764_v18 = vld [vmem:[%s4236_s2 + $0x38] sm:$0xff]  }
   0x7   :  { %2293 = vmatpush3.bf16.msra.mxu0 %v2752_v4  ;;  %2739 = vmatpush3.bf16.msra.mxu1 %v2752_v4  ;;  %v2765_v19 = vld [vmem:[%s4237_s0] ss:$8 sps:$4 sm:$0xff]   ;;  %v2768_v21 = vld [vmem:[%s4237_s0 + $0x14] ss:$8 sps:$4 sm:$0xff]   ;;  %v2770_v27 = vld [vmem:[%s4237_s0 + $0x10] ss:$8 sps:$4 sm:$0xff]  }
   0x8   :  { %2294 = vmatprep.subr.bf16.mxu0 %v2753_v5  ;;  %2732 = vmatprep.subr.bf16.mxu1 %v2753_v5  ;;  %v2771_v20 = vld [vmem:[%s4237_s0 + $0xc0] ss:$8 sps:$4 sm:$0xff]   ;;  %v2777_v22 = vld [vmem:[%s4237_s0 + $0xd4] ss:$8 sps:$4 sm:$0xff]   ;;  %v2779_v28 = vld [vmem:[%s4237_s0 + $0xd0] ss:$8 sps:$4 sm:$0xff]  }
   0x9   :  { %513 = vmatprep.mubr.bf16.mxu1 %v2773_v14  ;;  %v67_v23 = vld [vmem:[%s4238_s1 + $0x10] sm:$0xff]  ;;  %v65_v24 = vld [vmem:[%s4238_s1] sm:$0xff]  ;;  %v68_v25 = vld [vmem:[%s4238_s1 + $0x18] sm:$0xff] }
   0xa   :  { %558 = vperm.xlu1 %2748, %v67_v23   ;;  %548 = vperm.xlu0 %2747, %v65_v24   ;;  %v66_v26 = vld [vmem:[%s4238_s1 + $0x8] sm:$0xff]  ;;  %v69_v32 = vld [vmem:[%s4238_s1 + $0x20] sm:$0xff]  ;;  %v72_v33 = vld [vmem:[%s4238_s1 + $0x38] sm:$0xff] }
   0xb   :  { %2295 = vmatpush3.bf16.msra.mxu0 %v2754_v6  ;;  %2740 = vmatpush3.bf16.msra.mxu1 %v2754_v6  ;;  %v2774_v29 = vld [vmem:[%s4237_s0 + $0x24] ss:$8 sps:$4 sm:$0xff]   ;;  %v71_v34 = vld [vmem:[%s4238_s1 + $0x30] sm:$0xff]  ;;  %v2776_v35 = vld [vmem:[%s4237_s0 + $0x20] ss:$8 sps:$4 sm:$0xff]  }
   0xc   :  { %2296 = vmatprep.subr.bf16.mxu0 %v2755_v7  ;;  %2733 = vmatprep.subr.bf16.mxu1 %v2755_v7  ;;  %v2783_v30 = vld [vmem:[%s4237_s0 + $0xe4] ss:$8 sps:$4 sm:$0xff]   ;;  %v2780_v36 = vld [vmem:[%s4237_s0 + $0x34] ss:$8 sps:$4 sm:$0xff]   ;;  %v2785_v37 = vld [vmem:[%s4237_s0 + $0xe0] ss:$8 sps:$4 sm:$0xff]  }
   0xd   :  { %v70_v31 = vld [vmem:[%s4238_s1 + $0x28] sm:$0xff]  ;;  %v2789_v38 = vld [vmem:[%s4237_s0 + $0xf4] ss:$8 sps:$4 sm:$0xff]   ;;  %v73_v40 = vld [vmem:[%s4238_s1 + $0x40] sm:$0xff] }
   0xe   :  { %563 = vperm.xlu1 %2748, %v68_v25   ;;  %553 = vperm.xlu0 %2747, %v66_v26   ;;  %v74_v39 = vld [vmem:[%s4238_s1 + $0x48] sm:$0xff]  ;;  %v2813_v41 = vld [vmem:[%s4239_s4] sm:$0xff]   ;;  %v2782_v45 = vld [vmem:[%s4237_s0 + $0x30] ss:$8 sps:$4 sm:$0xff]  }
   0xf   :  { %2297 = vmatpush3.bf16.msra.mxu0 %v2756_v8  ;;  %2741 = vmatpush3.bf16.msra.mxu1 %v2756_v8  ;;  %v2814_v42 = vld [vmem:[%s4240_s5] sm:$0xff]   ;;  %v2815_v43 = vld [vmem:[%s4239_s4 + $0x8] sm:$0xff]   ;;  %v2791_v46 = vld [vmem:[%s4237_s0 + $0xf0] ss:$8 sps:$4 sm:$0xff]  }
  0x10   :  { %2298 = vmatprep.subr.bf16.mxu0 %v2757_v9  ;;  %2734 = vmatprep.subr.bf16.mxu1 %v2757_v9  ;;  %v2816_v44 = vld [vmem:[%s4240_s5 + $0x8] sm:$0xff]   ;;  %v76_v47 = vld [vmem:[%s4238_s1 + $0x58] sm:$0xff]  ;;  %v75_v49 = vld [vmem:[%s4238_s1 + $0x50] sm:$0xff] }
  0x11   :  { %v2786_v48 = vld [vmem:[%s4237_s0 + $0x44] ss:$8 sps:$4 sm:$0xff]   ;;  %v2817_v52 = vld [vmem:[%s4239_s4 + $0x10] sm:$0xff]   ;;  %v80_v54 = vld [vmem:[%s4238_s1 + $0x78] sm:$0xff] }
  0x12   :  { %573 = vperm.xlu1 %2748, %v70_v31   ;;  %568 = vperm.xlu0 %2747, %v69_v32   ;;  %v78_v50 = vld [vmem:[%s4238_s1 + $0x68] sm:$0xff]  ;;  %v77_v51 = vld [vmem:[%s4238_s1 + $0x60] sm:$0xff]  ;;  %v2818_v53 = vld [vmem:[%s4240_s5 + $0x10] sm:$0xff]  }
  0x13   :  { %2299 = vmatpush3.bf16.msra.mxu0 %v2758_v10  ;;  %2742 = vmatpush3.bf16.msra.mxu1 %v2758_v10  ;;  %v79_v55 = vld [vmem:[%s4238_s1 + $0x70] sm:$0xff]  ;;  %v2788_v56 = vld [vmem:[%s4237_s0 + $0x40] ss:$8 sps:$4 sm:$0xff]   ;;  %v84_v60 = vld [vmem:[%s4238_s1 + $0x98] sm:$0xff] }
  0x14   :  { %2300 = vmatprep.subr.bf16.mxu0 %v2759_v11  ;;  %2735 = vmatprep.subr.bf16.mxu1 %v2759_v11  ;;  %v2792_v57 = vld [vmem:[%s4237_s0 + $0x54] ss:$8 sps:$4 sm:$0xff]   ;;  %v82_v58 = vld [vmem:[%s4238_s1 + $0x88] sm:$0xff]  ;;  %v81_v59 = vld [vmem:[%s4238_s1 + $0x80] sm:$0xff] }
  0x15   :  { %v83_v61 = vld [vmem:[%s4238_s1 + $0x90] sm:$0xff]  ;;  %v2795_v63 = vld [vmem:[%s4237_s0 + $0x64] ss:$8 sps:$4 sm:$0xff]   ;;  %v88_v2 = vld [vmem:[%s4238_s1 + $0xb8] sm:$0xff] }
  0x16   :  { %583 = vperm.xlu1 %2748, %v72_v33   ;;  %578 = vperm.xlu0 %2747, %v71_v34   ;;  %v2794_v62 = vld [vmem:[%s4237_s0 + $0x50] ss:$8 sps:$4 sm:$0xff]   ;;  %v86_v0 = vld [vmem:[%s4238_s1 + $0xa8] sm:$0xff]  ;;  %v85_v1 = vld [vmem:[%s4238_s1 + $0xa0] sm:$0xff] }
  0x17   :  { %2301 = vmatpush3.bf16.msra.mxu0 %v2760_v13  ;;  %2743 = vmatpush3.bf16.msra.mxu1 %v2760_v13  ;;  %v87_v3 = vld [vmem:[%s4238_s1 + $0xb0] sm:$0xff]  ;;  %v3241_v4 = vld [vmem:[%s4237_s0 + $0x60] ss:$8 sps:$4 sm:$0xff]   ;;  %v92_v8 = vld [vmem:[%s4238_s1 + $0xd8] sm:$0xff] }
  0x18   :  { %2302 = vmatprep.subr.bf16.mxu0 %v2761_v15  ;;  %2736 = vmatprep.subr.bf16.mxu1 %v2761_v15  ;;  %v3246_v5 = vld [vmem:[%s4237_s0 + $0x74] ss:$8 sps:$4 sm:$0xff]   ;;  %v90_v6 = vld [vmem:[%s4238_s1 + $0xc8] sm:$0xff]  ;;  %v89_v7 = vld [vmem:[%s4238_s1 + $0xc0] sm:$0xff] }
  0x19   :  { %v91_v9 = vld [vmem:[%s4238_s1 + $0xd0] sm:$0xff]  ;;  %v3270_v11 = vld [vmem:[%s4237_s0 + $0x84] ss:$8 sps:$4 sm:$0xff]   ;;  %v96_v14 = vld [vmem:[%s4238_s1 + $0xf8] sm:$0xff] }
  0x1a   :  { %593 = vperm.xlu1 %2748, %v74_v39   ;;  %588 = vperm.xlu0 %2747, %v73_v40   ;;  %v3265_v10 = vld [vmem:[%s4237_s0 + $0x70] ss:$8 sps:$4 sm:$0xff]   ;;  %v94_v12 = vld [vmem:[%s4238_s1 + $0xe8] sm:$0xff]  ;;  %v93_v13 = vld [vmem:[%s4238_s1 + $0xe0] sm:$0xff] }
  0x1b   :  { %2303 = vmatpush3.bf16.msra.mxu0 %v2762_v16  ;;  %2744 = vmatpush3.bf16.msra.mxu1 %v2762_v16  ;;  %v95_v15 = vld [vmem:[%s4238_s1 + $0xf0] sm:$0xff]  ;;  %v3289_v16 = vld [vmem:[%s4237_s0 + $0x80] ss:$8 sps:$4 sm:$0xff]   ;;  %v2820_v23 = vld [vmem:[%s4240_s5 + $0x18] sm:$0xff]  }
  0x1c   :  { %2304 = vmatprep.subr.bf16.mxu0 %v2763_v17  ;;  %2737 = vmatprep.subr.bf16.mxu1 %v2763_v17  ;;  %v3294_v17 = vld [vmem:[%s4237_s0 + $0x94] ss:$8 sps:$4 sm:$0xff]   ;;  %v3331_v24 = vld [vmem:[%s4237_s0 + $0xb0] ss:$8 sps:$4 sm:$0xff]   ;;  %v2821_v25 = vld [vmem:[%s4239_s4 + $0x20] sm:$0xff]  }
  0x1d   :  { %v2822_v26 = vld [vmem:[%s4240_s5 + $0x20] sm:$0xff]   ;;  %v2827_v31 = vld [vmem:[%s4239_s4 + $0x38] sm:$0xff]  }
  0x1e   :  { %603 = vperm.xlu1 %2748, %v76_v47   ;;  %598 = vperm.xlu0 %2747, %v75_v49   ;;  %v2828_v32 = vld [vmem:[%s4240_s5 + $0x38] sm:$0xff]  }
  0x1f   :  { %2305 = vmatpush3.bf16.msra.mxu0 %v2764_v18  ;;  %2745 = vmatpush3.bf16.msra.mxu1 %v2764_v18  ;;  %v3301_v18 = vld [vmem:[%s4237_s0 + $0x90] ss:$8 sps:$4 sm:$0xff]  }
  0x20   :  { %2586 = vmatprep.subr.bf16.mxu1 %v2813_v41  ;;  %2634 = vmatprep.subr.bf16.mxu0 %v2814_v42 }
  0x22   :  { %418 = vmatmul.mubr.bf16.vlgmr.msra.gmra.mrb[0].mxu0 %v2765_v19  ;;  %514 = vmatmul.mubr.bf16.vlgmr.msra.gmra.mrb[0].mxu1 %v2771_v20  ;;  %v3306_v19 = vld [vmem:[%s4237_s0 + $0xa4] ss:$8 sps:$4 sm:$0xff]   ;;  %v3313_v20 = vld [vmem:[%s4237_s0 + $0xa0] ss:$8 sps:$4 sm:$0xff]  }
  0x23   :  { %425 = vmatprep.mubr.bf16.mxu0 %v2768_v21  ;;  %521 = vmatprep.mubr.bf16.mxu1 %v2777_v22  ;;  %v3318_v21 = vld [vmem:[%s4237_s0 + $0xb4] ss:$8 sps:$4 sm:$0xff]  }
  0x24   :  { %2587 = vmatpush3.bf16.msra.mxu1 %v2813_v41  ;;  %2635 = vmatpush3.bf16.msra.mxu0 %v2814_v42  ;;  %v2819_v22 = vld [vmem:[%s4239_s4 + $0x18] sm:$0xff]  }
  0x25   :  { %2588 = vmatprep.subr.bf16.mxu1 %v2815_v43  ;;  %2636 = vmatprep.subr.bf16.mxu0 %v2816_v44 }
  0x26   :  { %613 = vperm.xlu1 %2748, %v78_v50   ;;  %608 = vperm.xlu0 %2747, %v77_v51  }
  0x28   :  { %2589 = vmatpush3.bf16.msra.mxu1 %v2815_v43  ;;  %2637 = vmatpush3.bf16.msra.mxu0 %v2816_v44 }
  0x29   :  { %2590 = vmatprep.subr.bf16.mxu1 %v2817_v52  ;;  %2638 = vmatprep.subr.bf16.mxu0 %v2818_v53 }
  0x2a   :  { %426 = vmatmul.mubr.bf16.gmra.mrb[4].mxu0 %v2770_v27  ;;  %522 = vmatmul.mubr.bf16.gmra.mrb[4].mxu1 %v2779_v28  ;;  %v2823_v27 = vld [vmem:[%s4239_s4 + $0x28] sm:$0xff]  }
  0x2b   :  { %433 = vmatprep.mubr.bf16.mxu0 %v2774_v29  ;;  %529 = vmatprep.mubr.bf16.mxu1 %v2783_v30  ;;  %v2824_v28 = vld [vmem:[%s4240_s5 + $0x28] sm:$0xff]   ;;  %v2825_v29 = vld [vmem:[%s4239_s4 + $0x30] sm:$0xff]  }
  0x2c   :  { %2591 = vmatpush3.bf16.msra.mxu1 %v2817_v52  ;;  %623 = vperm.xlu1 %2748, %v80_v54   ;;  %v2826_v30 = vld [vmem:[%s4240_s5 + $0x30] sm:$0xff]  }
  0x2d   :  { %618 = vperm.xlu0 %2747, %v79_v55   ;;  %2639 = vmatpush3.bf16.msra.mxu0 %v2818_v53 }
  0x2e   :  { %2592 = vmatprep.subr.bf16.mxu1 %v2819_v22  ;;  %2640 = vmatprep.subr.bf16.mxu0 %v2820_v23 }
  0x30   :  { %633 = vperm.xlu1 %2748, %v82_v58   ;;  %2593 = vmatpush3.bf16.msra.mxu1 %v2819_v22  ;;  %v763_v22 = vld [vmem:[%s4241_s3 + $0xc8] sm:$0xff] }
  0x31   :  { %628 = vperm.xlu0 %2747, %v81_v59   ;;  %2641 = vmatpush3.bf16.msra.mxu0 %v2820_v23 }
  0x32   :  { %434 = vmatmul.mubr.bf16.gmra.mrb[8].mxu0 %v2776_v35  ;;  %530 = vmatmul.mubr.bf16.gmra.mrb[8].mxu1 %v2785_v37 }
  0x33   :  { %441 = vmatprep.mubr.bf16.mxu0 %v2780_v36  ;;  %537 = vmatprep.mubr.bf16.mxu1 %v2789_v38 }
  0x34   :  { %643 = vperm.xlu1 %2748, %v84_v60   ;;  %2594 = vmatprep.subr.bf16.mxu1 %v2821_v25 }
  0x35   :  { %638 = vperm.xlu0 %2747, %v83_v61   ;;  %2642 = vmatprep.subr.bf16.mxu0 %v2822_v26 }
  0x36   :  { %2595 = vmatpush3.bf16.msra.mxu1 %v2821_v25  ;;  %2643 = vmatpush3.bf16.msra.mxu0 %v2822_v26 }
  0x37   :  { %2596 = vmatprep.subr.bf16.mxu1 %v2823_v27  ;;  %2644 = vmatprep.subr.bf16.mxu0 %v2824_v28 }
  0x38   :  { %653 = vperm.xlu1 %2748, %v86_v0  }
  0x39   :  { %648 = vperm.xlu0 %2747, %v85_v1  }
  0x3a   :  { %442 = vmatmul.mubr.bf16.gmra.mrb[12].mxu0 %v2782_v45  ;;  %538 = vmatmul.mubr.bf16.gmra.mrb[12].mxu1 %v2791_v46 }
  0x3b   :  { %449 = vmatprep.mubr.bf16.mxu0 %v2786_v48  ;;  %2597 = vmatpush3.bf16.msra.mxu1 %v2823_v27 }
  0x3c   :  { %663 = vperm.xlu1 %2748, %v88_v2   ;;  %2645 = vmatpush3.bf16.msra.mxu0 %v2824_v28 }
  0x3d   :  { %658 = vperm.xlu0 %2747, %v87_v3   ;;  %2598 = vmatprep.subr.bf16.mxu1 %v2825_v29  ;;  %v738_v3 = vld [vmem:[%s4241_s3] sm:$0xff] }
  0x3e   :  { %2646 = vmatprep.subr.bf16.mxu0 %v2826_v30 }
  0x3f   :  { %2599 = vmatpush3.bf16.msra.mxu1 %v2825_v29 }
  0x40   :  { %673 = vperm.xlu1 %2748, %v90_v6   ;;  %2647 = vmatpush3.bf16.msra.mxu0 %v2826_v30 }
  0x41   :  { %668 = vperm.xlu0 %2747, %v89_v7   ;;  %2600 = vmatprep.subr.bf16.mxu1 %v2827_v31 }
  0x42   :  { %450 = vmatmul.mubr.bf16.gmra.mrb[16].mxu0 %v2788_v56  ;;  %2648 = vmatprep.subr.bf16.mxu0 %v2828_v32 }
  0x43   :  { %457 = vmatprep.mubr.bf16.mxu0 %v2792_v57  ;;  %2601 = vmatpush3.bf16.msra.mxu1 %v2827_v31 }
  0x44   :  { %683 = vperm.xlu1 %2748, %v92_v8   ;;  %2649 = vmatpush3.bf16.msra.mxu0 %v2828_v32  ;;  %v762_v8 = vld [vmem:[%s4241_s3 + $0xc0] sm:$0xff] }
  0x45   :  { %678 = vperm.xlu0 %2747, %v91_v9  }
  0x48   :  { %693 = vperm.xlu1 %2748, %v94_v12  }
  0x49   :  { %688 = vperm.xlu0 %2747, %v93_v13  }
  0x4a   :  { %458 = vmatmul.mubr.bf16.gmra.mrb[20].mxu0 %v2794_v62 }
  0x4b   :  { %465 = vmatprep.mubr.bf16.mxu0 %v2795_v63 }
  0x4c   :  { %703 = vperm.xlu1 %2748, %v96_v14  }
  0x4d   :  { %698 = vperm.xlu0 %2747, %v95_v15   ;;  %v739_v15 = vld [vmem:[%s4241_s3 + $0x8] sm:$0xff] }
  0x52   :  { %466 = vmatmul.mubr.bf16.gmra.mrb[24].mxu0 %v3241_v4 }
  0x53   :  { %473 = vmatprep.mubr.bf16.mxu0 %v3246_v5 }
  0x5a   :  { %474 = vmatmul.mubr.bf16.gmra.mrb[28].mxu0 %v3265_v10 }
  0x5b   :  { %481 = vmatprep.mubr.bf16.mxu0 %v3270_v11 }
  0x62   :  { %482 = vmatmul.mubr.bf16.gmra.mrb[32].mxu0 %v3289_v16 }
  0x63   :  { %489 = vmatprep.mubr.bf16.mxu0 %v3294_v17 }
  0x6a   :  { %490 = vmatmul.mubr.bf16.gmra.mrb[36].mxu0 %v3301_v18 }
  0x6b   :  { %497 = vmatprep.mubr.bf16.mxu0 %v3306_v19 }
  0x72   :  { %498 = vmatmul.mubr.bf16.gmra.mrb[40].mxu0 %v3313_v20 }
  0x73   :  { %505 = vmatprep.mubr.bf16.mxu0 %v3318_v21 }
  0x7a   :  { %506 = vmatmul.mubr.bf16.gmra.mrb[44].mxu0 %v3331_v24 }
  0x89   :  { %v3358_v33 = vpop.permute.xlu1 %558  ;;  %v3360_v34 = vpop.permute.xlu0 %548 }
  0x8d   :  { %v3362_v35 = vpop.permute.xlu1 %563  ;;  %v3364_v36 = vpop.permute.xlu0 %553 }
  0x91   :  { %v3366_v37 = vpop.permute.xlu1 %573  ;;  %v3368_v38 = vpop.permute.xlu0 %568 }
  0x95   :  { %v3370_v39 = vpop.permute.xlu1 %583  ;;  %v3372_v40 = vpop.permute.xlu0 %578 }
  0x96   :  { %4264 = vst [vmem:[#allocation2_spill] sm:$0xff] %v3372_v40 }
  0x99   :  { %v3374_v41 = vpop.permute.xlu1 %593  ;;  %v3376_v42 = vpop.permute.xlu0 %588 }
  0x9d   :  { %v3378_v43 = vpop.permute.xlu1 %603  ;;  %v3380_v44 = vpop.permute.xlu0 %598 }
  0xa5   :  { %v3382_v45 = vpop.permute.xlu1 %613  ;;  %v3384_v46 = vpop.permute.xlu0 %608 }
  0xab   :  { %v3386_v47 = vpop.permute.xlu1 %623 }
  0xac   :  { %4265 = vst [vmem:[#allocation3_spill] sm:$0xff] %v3386_v47  ;;  %v3388_v48 = vpop.permute.xlu0 %618 }
  0xaf   :  { %v3390_v49 = vpop.permute.xlu1 %633 }
  0xb0   :  { %4266 = vst [vmem:[#allocation4_spill] sm:$0xff] %v3390_v49  ;;  %v3392_v50 = vpop.permute.xlu0 %628 }
  0xb1   :  { %4267 = vst [vmem:[#allocation5_spill] sm:$0xff] %v3392_v50 }
  0xb3   :  { %v3394_v51 = vpop.permute.xlu1 %643 }
  0xb4   :  { %4268 = vst [vmem:[#allocation6_spill] sm:$0xff] %v3394_v51  ;;  %v3396_v52 = vpop.permute.xlu0 %638 }
  0xb5   :  { %4269 = vst [vmem:[#allocation7_spill] sm:$0xff] %v3396_v52 }
  0xb7   :  { %v3398_v53 = vpop.permute.xlu1 %653 }
  0xb8   :  { %4270 = vst [vmem:[#allocation8_spill] sm:$0xff] %v3398_v53  ;;  %v3400_v54 = vpop.permute.xlu0 %648 }
  0xb9   :  { %4271 = vst [vmem:[#allocation9_spill] sm:$0xff] %v3400_v54 }
  0xbb   :  { %v3402_v55 = vpop.permute.xlu1 %663 }
  0xbc   :  { %4272 = vst [vmem:[#allocation10_spill] sm:$0xff] %v3402_v55  ;;  %v3404_v56 = vpop.permute.xlu0 %658 }
  0xbd   :  { %4273 = vst [vmem:[#allocation11_spill] sm:$0xff] %v3404_v56 }
  0xbf   :  { %v3406_v57 = vpop.permute.xlu1 %673 }
  0xc0   :  { %4274 = vst [vmem:[#allocation12_spill] sm:$0xff] %v3406_v57  ;;  %v3408_v58 = vpop.permute.xlu0 %668 }
  0xc1   :  { %4275 = vst [vmem:[#allocation13_spill] sm:$0xff] %v3408_v58 }
  0xc3   :  { %v3426_v28 = vpop.permute.xlu1 %683 }
  0xc4   :  { %4276 = vst [vmem:[#allocation14_spill] sm:$0xff] %v3426_v28  ;;  %v3428_v29 = vpop.permute.xlu0 %678 }
  0xc5   :  { %4277 = vst [vmem:[#allocation15_spill] sm:$0xff] %v3428_v29 }
  0xf5   :  { %v2306_v59 = vpop.f32.mrb[0].mxu0  ;;  %v2378_v60 = vpop.f32.mrb[0].mxu1 }
  0xf6   :  { %v2307_v61 = vpop.f32.mrb[1].mxu0  ;;  %v2379_v62 = vpop.f32.mrb[1].mxu1 }
  0xf7   :  { %v2308_v63 = vadd.f32 %v2307_v61, %v2306_v59  ;;  %v2309_v0 = vpop.f32.mrb[2].mxu0  ;;  %v2380_v1 = vadd.f32 %v2379_v62, %v2378_v60  ;;  %v2381_v2 = vpop.f32.mrb[2].mxu1 }
  0xf8   :  { %v2310_v6 = vpop.f32.mrb[3].mxu0  ;;  %v2382_v7 = vpop.f32.mrb[3].mxu1 }
  0xf9   :  { %v706_v9 = vmul.f32 %v2308_v63, %v3360_v34  ;;  %v2311_v12 = vadd.f32 %v2310_v6, %v2309_v0  ;;  %v2383_v13 = vadd.f32 %v2382_v7, %v2381_v2  ;;  %v730_v14 = vmul.f32 %v2380_v1, %v3408_v58 }
  0xfb   :  { %v770_v23 = vadd.f32 %v738_v3, %v706_v9  ;;  %v707_v25 = vmul.f32 %v2311_v12, %v3364_v36  ;;  %v731_v26 = vmul.f32 %v2383_v13, %v3406_v57  ;;  %v794_v27 = vadd.f32 %v762_v8, %v730_v14  ;;  %v740_v8 = vld [vmem:[%s4241_s3 + $0x10] sm:$0xff] }
  0xfd   :  { %v771_v30 = vadd.f32 %v739_v15, %v707_v25  ;;  %v2312_v31 = vpop.f32.mrb[4].mxu0  ;;  %v2384_v32 = vpop.f32.mrb[4].mxu1  ;;  %v795_v59 = vadd.f32 %v763_v22, %v731_v26  ;;  %v802_v60 = vmax.f32 %v770_v23, 0.0  ;;  %v826_v62 = vmax.f32 %v794_v27, 0.0  ;;  %v764_v23 = vld [vmem:[%s4241_s3 + $0xd0] sm:$0xff]  ;;  %v741_v25 = vld [vmem:[%s4241_s3 + $0x18] sm:$0xff] }
  0xfe   :  { %v2313_v61 = vpop.f32.mrb[5].mxu0  ;;  %v2385_v63 = vpop.f32.mrb[5].mxu1  ;;  %v765_v26 = vld [vmem:[%s4241_s3 + $0xd8] sm:$0xff] }
  0xff   :  { %v803_v0 = vmax.f32 %v771_v30, 0.0  ;;  %v2314_v1 = vadd.f32 %v2313_v61, %v2312_v31  ;;  %v2315_v2 = vpop.f32.mrb[6].mxu0  ;;  %v827_v3 = vmax.f32 %v795_v59, 0.0  ;;  %v2386_v6 = vadd.f32 %v2385_v63, %v2384_v32  ;;  %v2387_v7 = vpop.f32.mrb[6].mxu1 }
 0x100   :  { %v2316_v9 = vpop.f32.mrb[7].mxu0  ;;  %v2388_v12 = vpop.f32.mrb[7].mxu1 }
 0x101   :  { %v708_v13 = vmul.f32 %v2314_v1, %v3358_v33  ;;  %v2317_v14 = vadd.f32 %v2316_v9, %v2315_v2  ;;  %v834_v15 = vpack.c.bf16 %v803_v0, %v802_v60  ;;  %v2389_v22 = vadd.f32 %v2388_v12, %v2387_v7  ;;  %v3448_v61 = vpop.permute.xlu1 %693  ;;  %v3450_v63 = vpop.permute.xlu0 %688 }
 0x102   :  { %v732_v27 = vmul.f32 %v2386_v6, %v3428_v29  ;;  %v3444_v30 = vpack.c.bf16 %v827_v3, %v826_v62  ;;  %4278 = vst [vmem:[#allocation16_spill] sm:$0xff] %v3448_v61  ;;  %4279 = vst [vmem:[#allocation17_spill] sm:$0xff] %v3450_v63 }
 0x103   :  { %v772_v31 = vadd.f32 %v740_v8, %v708_v13  ;;  %v709_v32 = vmul.f32 %v2317_v14, %v3362_v35  ;;  %2602 = vmatprep.mubr.bf16.mxu1 %v834_v15  ;;  %2650 = vmatprep.mubr.bf16.mxu0 %v834_v15  ;;  %v733_v59 = vmul.f32 %v2389_v22, %v3426_v28  ;;  %v742_v22 = vld [vmem:[%s4241_s3 + $0x20] sm:$0xff] }
 0x104   :  { %v796_v60 = vadd.f32 %v764_v23, %v732_v27 }
 0x105   :  { %v773_v0 = vadd.f32 %v741_v25, %v709_v32  ;;  %v2318_v1 = vpop.f32.mrb[8].mxu0  ;;  %v2390_v2 = vpop.f32.mrb[8].mxu1  ;;  %v797_v7 = vadd.f32 %v765_v26, %v733_v59  ;;  %v804_v9 = vmax.f32 %v772_v31, 0.0  ;;  %v766_v59 = vld [vmem:[%s4241_s3 + $0xe0] sm:$0xff] }
 0x106   :  { %v2319_v6 = vpop.f32.mrb[9].mxu0  ;;  %v828_v62 = vmax.f32 %v796_v60, 0.0  ;;  %v2391_v3 = vpop.f32.mrb[9].mxu1  ;;  %v743_v60 = vld [vmem:[%s4241_s3 + $0x28] sm:$0xff] }
 0x107   :  { %v805_v8 = vmax.f32 %v773_v0, 0.0  ;;  %v2320_v12 = vadd.f32 %v2319_v6, %v2318_v1  ;;  %v2321_v13 = vpop.f32.mrb[10].mxu0  ;;  %v829_v14 = vmax.f32 %v797_v7, 0.0  ;;  %v2392_v15 = vadd.f32 %v2391_v3, %v2390_v2  ;;  %v2393_v29 = vpop.f32.mrb[10].mxu1  ;;  %v767_v0 = vld [vmem:[%s4241_s3 + $0xe8] sm:$0xff] }
 0x108   :  { %v2322_v23 = vpop.f32.mrb[11].mxu0  ;;  %v2394_v27 = vpop.f32.mrb[11].mxu1 }
 0x109   :  { %v835_v25 = vpack.c.bf16 %v805_v8, %v804_v9  ;;  %v710_v32 = vmul.f32 %v2320_v12, %v3368_v38  ;;  %v2323_v26 = vadd.f32 %v2322_v23, %v2321_v13  ;;  %v2395_v31 = vadd.f32 %v2394_v27, %v2393_v29  ;;  %v3470_v3 = vpop.permute.xlu1 %703  ;;  %v3472_v8 = vpop.permute.xlu0 %698 }
 0x10a   :  { %v734_v1 = vmul.f32 %v2392_v15, %v3450_v63  ;;  %v3466_v2 = vpack.c.bf16 %v829_v14, %v828_v62  ;;  %4280 = vst [vmem:[#allocation18_spill] sm:$0xff] %v3470_v3  ;;  %4281 = vst [vmem:[#allocation19_spill] sm:$0xff] %v3472_v8 }
 0x10b   :  { %v774_v7 = vadd.f32 %v742_v22, %v710_v32  ;;  %v711_v9 = vmul.f32 %v2323_v26, %v3366_v37  ;;  %2603 = vmatmul.mubr.bf16.vlgmr.msra.gmra.mrb[16].mxu1 %v835_v25  ;;  %2651 = vmatmul.mubr.bf16.vlgmr.msra.gmra.mrb[48].mxu0 %v835_v25  ;;  %v735_v29 = vmul.f32 %v2395_v31, %v3448_v61  ;;  %v744_v31 = vld [vmem:[%s4241_s3 + $0x30] sm:$0xff] }
 0x10c   :  { %v798_v6 = vadd.f32 %v766_v59, %v734_v1 }
 0x10d   :  { %v775_v12 = vadd.f32 %v743_v60, %v711_v9  ;;  %v2324_v13 = vpop.f32.mrb[12].mxu0  ;;  %v2396_v23 = vpop.f32.mrb[12].mxu1  ;;  %v799_v27 = vadd.f32 %v767_v0, %v735_v29  ;;  %v806_v28 = vmax.f32 %v774_v7, 0.0  ;;  %v768_v29 = vld [vmem:[%s4241_s3 + $0xf0] sm:$0xff] }
 0x10e   :  { %v2325_v15 = vpop.f32.mrb[13].mxu0  ;;  %v830_v62 = vmax.f32 %v798_v6, 0.0  ;;  %v2397_v14 = vpop.f32.mrb[13].mxu1  ;;  %v745_v6 = vld [vmem:[%s4241_s3 + $0x38] sm:$0xff] }
 0x10f   :  { %v807_v22 = vmax.f32 %v775_v12, 0.0  ;;  %v2326_v32 = vadd.f32 %v2325_v15, %v2324_v13  ;;  %v2327_v26 = vpop.f32.mrb[14].mxu0  ;;  %v831_v63 = vmax.f32 %v799_v27, 0.0  ;;  %v2398_v25 = vadd.f32 %v2397_v14, %v2396_v23  ;;  %v2399_v57 = vpop.f32.mrb[14].mxu1  ;;  %v769_v12 = vld [vmem:[%s4241_s3 + $0xf8] sm:$0xff] }
 0x110   :  { %v2328_v59 = vpop.f32.mrb[15].mxu0  ;;  %v2400_v1 = vpop.f32.mrb[15].mxu1 }
 0x111   :  { %v712_v60 = vmul.f32 %v2326_v32, %v3372_v40  ;;  %v2329_v9 = vadd.f32 %v2328_v59, %v2327_v26  ;;  %v836_v0 = vpack.c.bf16 %v807_v22, %v806_v28  ;;  %v2401_v7 = vadd.f32 %v2400_v1, %v2399_v57 }
 0x112   :  { %v736_v13 = vmul.f32 %v2398_v25, %v3472_v8  ;;  %v3488_v23 = vpack.c.bf16 %v831_v63, %v830_v62  ;;  %v746_v63 = vld [vmem:[%s4241_s3 + $0x40] sm:$0xff] }
 0x113   :  { %v776_v27 = vadd.f32 %v744_v31, %v712_v60  ;;  %v713_v28 = vmul.f32 %v2329_v9, %v3370_v39  ;;  %2606 = vmatprep.mubr.bf16.mxu1 %v836_v0  ;;  %2654 = vmatprep.mubr.bf16.mxu0 %v836_v0  ;;  %v737_v57 = vmul.f32 %v2401_v7, %v3470_v3  ;;  %v747_v7 = vld [vmem:[%s4241_s3 + $0x48] sm:$0xff] }
 0x114   :  { %v800_v15 = vadd.f32 %v768_v29, %v736_v13 }
 0x115   :  { %v777_v14 = vadd.f32 %v745_v6, %v713_v28  ;;  %v2330_v22 = vpop.f32.mrb[16].mxu0  ;;  %v801_v32 = vadd.f32 %v769_v12, %v737_v57  ;;  %v808_v1 = vmax.f32 %v776_v27, 0.0 }
 0x116   :  { %v2331_v26 = vpop.f32.mrb[17].mxu0  ;;  %v832_v59 = vmax.f32 %v800_v15, 0.0 }
 0x117   :  { %v809_v61 = vmax.f32 %v777_v14, 0.0  ;;  %v2332_v58 = vadd.f32 %v2331_v26, %v2330_v22  ;;  %v2333_v40 = vpop.f32.mrb[18].mxu0  ;;  %v833_v25 = vmax.f32 %v801_v32, 0.0  ;;  %v749_v26 = vld [vmem:[%s4241_s3 + $0x58] sm:$0xff] }
 0x118   :  { %v2334_v62 = vpop.f32.mrb[19].mxu0 }
 0x119   :  { %v714_v31 = vmul.f32 %v2332_v58, %v3376_v42  ;;  %v2335_v60 = vadd.f32 %v2334_v62, %v2333_v40  ;;  %v837_v9 = vpack.c.bf16 %v809_v61, %v808_v1  ;;  %v3496_v0 = vpack.c.bf16 %v833_v25, %v832_v59  ;;  %v748_v40 = vld [vmem:[%s4241_s3 + $0x50] sm:$0xff] }
 0x11b   :  { %v778_v29 = vadd.f32 %v746_v63, %v714_v31  ;;  %v715_v6 = vmul.f32 %v2335_v60, %v3374_v41  ;;  %2607 = vmatmul.mubr.bf16.gmra.mrb[20].mxu1 %v837_v9  ;;  %2655 = vmatmul.mubr.bf16.gmra.mrb[52].mxu0 %v837_v9 }
 0x11d   :  { %v779_v12 = vadd.f32 %v747_v7, %v715_v6  ;;  %v2336_v13 = vpop.f32.mrb[20].mxu0  ;;  %v810_v28 = vmax.f32 %v778_v29, 0.0  ;;  %v750_v29 = vld [vmem:[%s4241_s3 + $0x60] sm:$0xff] }
 0x11e   :  { %v2337_v27 = vpop.f32.mrb[21].mxu0 }
 0x11f   :  { %v811_v57 = vmax.f32 %v779_v12, 0.0  ;;  %v2338_v15 = vadd.f32 %v2337_v27, %v2336_v13  ;;  %v2339_v58 = vpop.f32.mrb[22].mxu0 }
 0x120   :  { %v2340_v61 = vpop.f32.mrb[23].mxu0 }
 0x121   :  { %v716_v14 = vmul.f32 %v2338_v15, %v3380_v44  ;;  %v2341_v22 = vadd.f32 %v2340_v61, %v2339_v58  ;;  %v838_v32 = vpack.c.bf16 %v811_v57, %v810_v28  ;;  %v751_v28 = vld [vmem:[%s4241_s3 + $0x68] sm:$0xff] }
 0x123   :  { %v780_v59 = vadd.f32 %v748_v40, %v716_v14  ;;  %v717_v1 = vmul.f32 %v2341_v22, %v3378_v43  ;;  %2610 = vmatprep.mubr.bf16.mxu1 %v838_v32  ;;  %2658 = vmatprep.mubr.bf16.mxu0 %v838_v32 }
 0x125   :  { %v781_v25 = vadd.f32 %v749_v26, %v717_v1  ;;  %v2342_v63 = vpop.f32.mrb[24].mxu0  ;;  %v812_v31 = vmax.f32 %v780_v59, 0.0  ;;  %v752_v59 = vld [vmem:[%s4241_s3 + $0x70] sm:$0xff] }
 0x126   :  { %v2343_v62 = vpop.f32.mrb[25].mxu0 }
 0x127   :  { %v813_v60 = vmax.f32 %v781_v25, 0.0  ;;  %v2344_v9 = vadd.f32 %v2343_v62, %v2342_v63  ;;  %v2345_v7 = vpop.f32.mrb[26].mxu0 }
 0x128   :  { %v2346_v6 = vpop.f32.mrb[27].mxu0 }
 0x129   :  { %v718_v12 = vmul.f32 %v2344_v9, %v3384_v46  ;;  %v2347_v13 = vadd.f32 %v2346_v6, %v2345_v7  ;;  %v839_v27 = vpack.c.bf16 %v813_v60, %v812_v31  ;;  %v753_v31 = vld [vmem:[%s4241_s3 + $0x78] sm:$0xff] }
 0x12b   :  { %v782_v57 = vadd.f32 %v750_v29, %v718_v12  ;;  %v719_v15 = vmul.f32 %v2347_v13, %v3382_v45  ;;  %2611 = vmatmul.mubr.bf16.gmra.mrb[24].mxu1 %v839_v27  ;;  %2659 = vmatmul.mubr.bf16.gmra.mrb[56].mxu0 %v839_v27 }
 0x12d   :  { %v783_v58 = vadd.f32 %v751_v28, %v719_v15  ;;  %v2348_v40 = vpop.f32.mrb[28].mxu0  ;;  %v814_v14 = vmax.f32 %v782_v57, 0.0  ;;  %v754_v57 = vld [vmem:[%s4241_s3 + $0x80] sm:$0xff] }
 0x12e   :  { %v2349_v61 = vpop.f32.mrb[29].mxu0 }
 0x12f   :  { %v815_v22 = vmax.f32 %v783_v58, 0.0  ;;  %v2350_v32 = vadd.f32 %v2349_v61, %v2348_v40  ;;  %v2351_v26 = vpop.f32.mrb[30].mxu0 }
 0x130   :  { %v2352_v1 = vpop.f32.mrb[31].mxu0 }
 0x131   :  { %v720_v25 = vmul.f32 %v2350_v32, %v3388_v48  ;;  %v2353_v63 = vadd.f32 %v2352_v1, %v2351_v26  ;;  %v840_v62 = vpack.c.bf16 %v815_v22, %v814_v14  ;;  %v755_v14 = vld [vmem:[%s4241_s3 + $0x88] sm:$0xff] }
 0x133   :  { %v784_v60 = vadd.f32 %v752_v59, %v720_v25  ;;  %v721_v9 = vmul.f32 %v2353_v63, %v3386_v47  ;;  %2614 = vmatprep.mubr.bf16.mxu1 %v840_v62  ;;  %2662 = vmatprep.mubr.bf16.mxu0 %v840_v62 }
 0x135   :  { %v785_v7 = vadd.f32 %v753_v31, %v721_v9  ;;  %v2354_v29 = vpop.f32.mrb[32].mxu0  ;;  %v816_v12 = vmax.f32 %v784_v60, 0.0  ;;  %v756_v60 = vld [vmem:[%s4241_s3 + $0x90] sm:$0xff] }
 0x136   :  { %v2355_v6 = vpop.f32.mrb[33].mxu0 }
 0x137   :  { %v817_v13 = vmax.f32 %v785_v7, 0.0  ;;  %v2356_v27 = vadd.f32 %v2355_v6, %v2354_v29  ;;  %v2357_v28 = vpop.f32.mrb[34].mxu0 }
 0x138   :  { %v2358_v15 = vpop.f32.mrb[35].mxu0 }
 0x139   :  { %v722_v58 = vmul.f32 %v2356_v27, %v3392_v50  ;;  %v2359_v40 = vadd.f32 %v2358_v15, %v2357_v28  ;;  %v841_v61 = vpack.c.bf16 %v817_v13, %v816_v12  ;;  %v757_v12 = vld [vmem:[%s4241_s3 + $0x98] sm:$0xff] }
 0x13b   :  { %v786_v22 = vadd.f32 %v754_v57, %v722_v58  ;;  %v723_v32 = vmul.f32 %v2359_v40, %v3390_v49  ;;  %2615 = vmatmul.mubr.bf16.gmra.mrb[28].mxu1 %v841_v61  ;;  %2663 = vmatmul.mubr.bf16.gmra.mrb[60].mxu0 %v841_v61 }
 0x13d   :  { %v787_v26 = vadd.f32 %v755_v14, %v723_v32  ;;  %v2360_v59 = vpop.f32.mrb[36].mxu0  ;;  %v818_v25 = vmax.f32 %v786_v22, 0.0  ;;  %v758_v22 = vld [vmem:[%s4241_s3 + $0xa0] sm:$0xff] }
 0x13e   :  { %v2361_v1 = vpop.f32.mrb[37].mxu0 }
 0x13f   :  { %v819_v63 = vmax.f32 %v787_v26, 0.0  ;;  %v2362_v62 = vadd.f32 %v2361_v1, %v2360_v59  ;;  %v2363_v31 = vpop.f32.mrb[38].mxu0 }
 0x140   :  { %v2364_v9 = vpop.f32.mrb[39].mxu0 }
 0x141   :  { %v724_v7 = vmul.f32 %v2362_v62, %v3396_v52  ;;  %v2365_v29 = vadd.f32 %v2364_v9, %v2363_v31  ;;  %v842_v6 = vpack.c.bf16 %v819_v63, %v818_v25  ;;  %v759_v25 = vld [vmem:[%s4241_s3 + $0xa8] sm:$0xff] }
 0x143   :  { %v788_v13 = vadd.f32 %v756_v60, %v724_v7  ;;  %v725_v27 = vmul.f32 %v2365_v29, %v3394_v51  ;;  %2618 = vmatprep.mubr.bf16.mxu1 %v842_v6  ;;  %2666 = vmatprep.mubr.bf16.mxu0 %v842_v6 }
 0x145   :  { %v789_v28 = vadd.f32 %v757_v12, %v725_v27  ;;  %v2366_v57 = vpop.f32.mrb[40].mxu0  ;;  %v820_v58 = vmax.f32 %v788_v13, 0.0  ;;  %v760_v13 = vld [vmem:[%s4241_s3 + $0xb0] sm:$0xff] }
 0x146   :  { %v2367_v15 = vpop.f32.mrb[41].mxu0 }
 0x147   :  { %v821_v40 = vmax.f32 %v789_v28, 0.0  ;;  %v2368_v61 = vadd.f32 %v2367_v15, %v2366_v57  ;;  %v2369_v14 = vpop.f32.mrb[42].mxu0 }
 0x148   :  { %v2370_v32 = vpop.f32.mrb[43].mxu0 }
 0x149   :  { %v726_v26 = vmul.f32 %v2368_v61, %v3400_v54  ;;  %v2371_v59 = vadd.f32 %v2370_v32, %v2369_v14  ;;  %v843_v1 = vpack.c.bf16 %v821_v40, %v820_v58  ;;  %v761_v58 = vld [vmem:[%s4241_s3 + $0xb8] sm:$0xff] }
 0x14b   :  { %v790_v63 = vadd.f32 %v758_v22, %v726_v26  ;;  %v727_v62 = vmul.f32 %v2371_v59, %v3398_v53  ;;  %2619 = vmatmul.mubr.bf16.gmra.mrb[32].mxu1 %v843_v1  ;;  %2667 = vmatmul.mubr.bf16.gmra.mrb[64].mxu0 %v843_v1  ;;  %v2965_v59 = vld [vmem:[%s4237_s0 + $0x4] ss:$8 sps:$4 sm:$0xff]  }
 0x14d   :  { %v791_v31 = vadd.f32 %v759_v25, %v727_v62  ;;  %v2372_v60 = vpop.f32.mrb[44].mxu0  ;;  %v822_v7 = vmax.f32 %v790_v63, 0.0 }
 0x14e   :  { %v2373_v9 = vpop.f32.mrb[45].mxu0 }
 0x14f   :  { %v823_v29 = vmax.f32 %v791_v31, 0.0  ;;  %v2374_v6 = vadd.f32 %v2373_v9, %v2372_v60  ;;  %v2375_v12 = vpop.f32.mrb[46].mxu0 }
 0x150   :  { %v2376_v27 = vpop.f32.mrb[47].mxu0 }
 0x151   :  { %v728_v28 = vmul.f32 %v2374_v6, %v3404_v56  ;;  %v2377_v57 = vadd.f32 %v2376_v27, %v2375_v12  ;;  %v844_v15 = vpack.c.bf16 %v823_v29, %v822_v7 }
 0x153   :  { %v792_v40 = vadd.f32 %v760_v13, %v728_v28  ;;  %v729_v61 = vmul.f32 %v2377_v57, %v3402_v55  ;;  %2622 = vmatprep.mubr.bf16.mxu1 %v844_v15  ;;  %2670 = vmatprep.mubr.bf16.mxu0 %v844_v15 }
 0x155   :  { %v793_v14 = vadd.f32 %v761_v58, %v729_v61  ;;  %v824_v22 = vmax.f32 %v792_v40, 0.0 }
 0x157   :  { %v825_v32 = vmax.f32 %v793_v14, 0.0 }
 0x159   :  { %v845_v26 = vpack.c.bf16 %v825_v32, %v824_v22 }
 0x15b   :  { %2623 = vmatmul.mubr.bf16.gmra.mrb[36].mxu1 %v845_v26  ;;  %2671 = vmatmul.mubr.bf16.gmra.mrb[68].mxu0 %v845_v26 }
 0x15c   :  { %2626 = vmatprep.mubr.bf16.mxu1 %v3444_v30  ;;  %2674 = vmatprep.mubr.bf16.mxu0 %v3444_v30 }
 0x163   :  { %2627 = vmatmul.mubr.bf16.gmra.mrb[40].mxu1 %v3466_v2  ;;  %2675 = vmatmul.mubr.bf16.gmra.mrb[72].mxu0 %v3466_v2 }
 0x164   :  { %2630 = vmatprep.mubr.bf16.mxu1 %v3488_v23  ;;  %2678 = vmatprep.mubr.bf16.mxu0 %v3488_v23 }
 0x16b   :  { %2631 = vmatmul.mubr.bf16.gmra.mrb[44].mxu1 %v3496_v0  ;;  %2679 = vmatmul.mubr.bf16.gmra.mrb[76].mxu0 %v3496_v0 }
 0x16c   :  { %1123 = vmatprep.mubr.bf16.mxu1 %v2965_v59 }
 0x1de   :  { %v2604_v1 = vpop.f32.mrb[16].mxu1  ;;  %v3569_v25 = vpop.f32.mrb[48].mxu0 }
 0x1df   :  { %v948_v30 = vpop.f32.mrb[17].mxu1  ;;  %v3571_v63 = vpop.f32.mrb[49].mxu0 }
 0x1e0   :  { %v2605_v2 = vpop.f32.mrb[18].mxu1  ;;  %v3573_v62 = vpop.f32.mrb[50].mxu0 }
 0x1e1   :  { %v1076_v31 = vpack.c.bf16 %v2605_v2, %v2604_v1  ;;  %v951_v23 = vpop.f32.mrb[19].mxu1  ;;  %v3575_v60 = vpop.f32.mrb[51].mxu0 }
 0x1e2   :  { %v1075_v9 = vpack.c.bf16 %v951_v23, %v948_v30 }
 0x1ee   :  { %v3577_v0 = vpop.f32.mrb[20].mxu1  ;;  %v3579_v7 = vpop.f32.mrb[52].mxu0 }
 0x1ef   :  { %v964_v29 = vpop.f32.mrb[21].mxu1  ;;  %v3581_v6 = vpop.f32.mrb[53].mxu0 }
 0x1f0   :  { %v2609_v12 = vpop.f32.mrb[22].mxu1  ;;  %v3583_v13 = vpop.f32.mrb[54].mxu0 }
 0x1f1   :  { %v1078_v27 = vpack.c.bf16 %v2609_v12, %v3577_v0  ;;  %v967_v28 = vpop.f32.mrb[23].mxu1  ;;  %v3586_v57 = vpop.f32.mrb[55].mxu0 }
 0x1f2   :  { %v1077_v15 = vpack.c.bf16 %v967_v28, %v964_v29 }
 0x1fe   :  { %v3588_v58 = vpop.f32.mrb[24].mxu1  ;;  %v3590_v40 = vpop.f32.mrb[56].mxu0 }
 0x1ff   :  { %v980_v61 = vpop.f32.mrb[25].mxu1  ;;  %v3592_v14 = vpop.f32.mrb[57].mxu0 }
 0x200   :  { %v3594_v22 = vpop.f32.mrb[26].mxu1  ;;  %v3596_v32 = vpop.f32.mrb[58].mxu0 }
 0x201   :  { %v1080_v26 = vpack.c.bf16 %v3594_v22, %v3588_v58  ;;  %v983_v59 = vpop.f32.mrb[27].mxu1  ;;  %v3600_v1 = vpop.f32.mrb[59].mxu0 }
 0x202   :  { %v1079_v30 = vpack.c.bf16 %v983_v59, %v980_v61 }
 0x20e   :  { %v3602_v2 = vpop.f32.mrb[28].mxu1  ;;  %v3604_v23 = vpop.f32.mrb[60].mxu0 }
 0x20f   :  { %v996_v0 = vpop.f32.mrb[29].mxu1  ;;  %v3606_v29 = vpop.f32.mrb[61].mxu0 }
 0x210   :  { %v3608_v12 = vpop.f32.mrb[30].mxu1  ;;  %v3610_v28 = vpop.f32.mrb[62].mxu0 }
 0x211   :  { %4282 = vst [vmem:[#allocation20_spill] sm:$0xff] %v3610_v28  ;;  %v999_v8 = vpop.f32.mrb[31].mxu1  ;;  %v3614_v58 = vpop.f32.mrb[63].mxu0 }
 0x212   :  { %v1081_v22 = vpack.c.bf16 %v999_v8, %v996_v0 }
 0x21e   :  { %v2620_v55 = vpop.f32.mrb[32].mxu1  ;;  %v3616_v61 = vpop.f32.mrb[64].mxu0 }
 0x21f   :  { %4283 = vst [vmem:[#allocation21_spill] sm:$0xff] %v3616_v61  ;;  %v1012_v59 = vpop.f32.mrb[33].mxu1  ;;  %v3618_v56 = vpop.f32.mrb[65].mxu0 }
 0x220   :  { %4284 = vst [vmem:[#allocation22_spill] sm:$0xff] %v3618_v56  ;;  %v2621_v53 = vpop.f32.mrb[34].mxu1  ;;  %v3620_v54 = vpop.f32.mrb[66].mxu0 }
 0x221   :  { %4285 = vst [vmem:[#allocation23_spill] sm:$0xff] %v3620_v54  ;;  %v1084_v51 = vpack.c.bf16 %v2621_v53, %v2620_v55  ;;  %v1015_v52 = vpop.f32.mrb[35].mxu1  ;;  %v3622_v49 = vpop.f32.mrb[67].mxu0 }
 0x222   :  { %v1083_v50 = vpack.c.bf16 %v1015_v52, %v1012_v59 }
 0x224   :  { %2426 = vmatprep.subr.bf16.mxu1 %v1083_v50 }
 0x225   :  { %2427 = vmatpush3.bf16.msra.mxu1 %v1075_v9 }
 0x226   :  { %2428 = vmatprep.subr.bf16.mxu1 %v1084_v51 }
 0x229   :  { %2429 = vmatpush3.bf16.msra.mxu1 %v1076_v31 }
 0x22e   :  { %v2624_v3 = vpop.f32.mrb[36].mxu1  ;;  %v3624_v8 = vpop.f32.mrb[68].mxu0 }
 0x22f   :  { %4286 = vst [vmem:[#allocation24_spill] sm:$0xff] %v3624_v8  ;;  %v1028_v0 = vpop.f32.mrb[37].mxu1  ;;  %v3626_v61 = vpop.f32.mrb[69].mxu0 }
 0x230   :  { %4287 = vst [vmem:[#allocation25_spill] sm:$0xff] %v3626_v61  ;;  %v2625_v28 = vpop.f32.mrb[38].mxu1  ;;  %v3628_v56 = vpop.f32.mrb[70].mxu0 }
 0x231   :  { %v1086_v47 = vpack.c.bf16 %v2625_v28, %v2624_v3  ;;  %v1031_v54 = vpop.f32.mrb[39].mxu1  ;;  %v3630_v53 = vpop.f32.mrb[71].mxu0 }
 0x232   :  { %v1085_v55 = vpack.c.bf16 %v1031_v54, %v1028_v0 }
 0x234   :  { %2430 = vmatprep.subr.bf16.mxu1 %v1085_v55 }
 0x235   :  { %2431 = vmatpush3.bf16.msra.mxu1 %v1077_v15 }
 0x236   :  { %v2628_v50 = vpop.f32.mrb[40].mxu1  ;;  %2432 = vmatprep.subr.bf16.mxu1 %v1086_v47  ;;  %v3632_v51 = vpop.f32.mrb[72].mxu0 }
 0x237   :  { %4288 = vst [vmem:[#allocation26_spill] sm:$0xff] %v3632_v51  ;;  %v1044_v52 = vpop.f32.mrb[41].mxu1  ;;  %v3634_v31 = vpop.f32.mrb[73].mxu0 }
 0x238   :  { %4289 = vst [vmem:[#allocation27_spill] sm:$0xff] %v3634_v31  ;;  %v2629_v9 = vpop.f32.mrb[42].mxu1  ;;  %v3636_v59 = vpop.f32.mrb[74].mxu0 }
 0x239   :  { %4290 = vst [vmem:[#allocation28_spill] sm:$0xff] %v3636_v59  ;;  %v1088_v8 = vpack.c.bf16 %v2629_v9, %v2628_v50  ;;  %v1047_v61 = vpop.f32.mrb[43].mxu1  ;;  %2433 = vmatpush3.bf16.msra.mxu1 %v1078_v27  ;;  %v3638_v3 = vpop.f32.mrb[75].mxu0  ;;  %v2972_v9 = vld [vmem:[%s4237_s0 + $0x30] ss:$8 sps:$4 sm:$0xff]  }
 0x23a   :  { %v1087_v28 = vpack.c.bf16 %v1047_v61, %v1044_v52  ;;  %v2830_v61 = vld [vmem:[%s4242_s7 + $0x8] sm:$0xff]   ;;  %v2968_v52 = vld [vmem:[%s4237_s0 + $0x10] ss:$8 sps:$4 sm:$0xff]  }
 0x23c   :  { %2434 = vmatprep.subr.bf16.mxu1 %v1087_v28  ;;  %v2974_v28 = vld [vmem:[%s4237_s0 + $0x40] ss:$8 sps:$4 sm:$0xff]  }
 0x23d   :  { %2435 = vmatpush3.bf16.msra.mxu1 %v1079_v30  ;;  %v2829_v30 = vld [vmem:[%s4242_s7] sm:$0xff]  }
 0x23e   :  { %v2632_v54 = vpop.f32.mrb[44].mxu1  ;;  %2436 = vmatprep.subr.bf16.mxu1 %v1088_v8  ;;  %v3640_v15 = vpop.f32.mrb[76].mxu0  ;;  %2682 = vmatprep.subr.bf16.mxu0 %v2829_v30  ;;  %v4291_v8 = vpack.c.bf16 %v3608_v12, %v3602_v2  ;;  %v2969_v2 = vld [vmem:[%s4237_s0 + $0x24] ss:$8 sps:$4 sm:$0xff]   ;;  %v2970_v12 = vld [vmem:[%s4237_s0 + $0x20] ss:$8 sps:$4 sm:$0xff]  }
 0x23f   :  { %v1060_v47 = vpop.f32.mrb[45].mxu1  ;;  %v3642_v0 = vpop.f32.mrb[77].mxu0  ;;  %2683 = vmatpush3.bf16.msra.mxu0 %v2829_v30  ;;  %v2984_v30 = vld [vmem:[%s4237_s0 + $0xf4] ss:$8 sps:$4 sm:$0xff]  }
 0x240   :  { %v2633_v55 = vpop.f32.mrb[46].mxu1  ;;  %v3644_v51 = vpop.f32.mrb[78].mxu0  ;;  %2684 = vmatprep.subr.bf16.mxu0 %v2830_v61 }
 0x241   :  { %v1090_v31 = vpack.c.bf16 %v2633_v55, %v2632_v54  ;;  %v1063_v59 = vpop.f32.mrb[47].mxu1  ;;  %2437 = vmatpush3.bf16.msra.mxu1 %v1080_v26  ;;  %v3646_v50 = vpop.f32.mrb[79].mxu0  ;;  %v2966_v26 = vld [vmem:[%s4237_s0] ss:$8 sps:$4 sm:$0xff]   ;;  %v2975_v54 = vld [vmem:[%s4237_s0 + $0x54] ss:$8 sps:$4 sm:$0xff]  }
 0x242   :  { %v1089_v27 = vpack.c.bf16 %v1063_v59, %v1060_v47  ;;  %v2973_v59 = vld [vmem:[%s4237_s0 + $0x44] ss:$8 sps:$4 sm:$0xff]   ;;  %v2976_v47 = vld [vmem:[%s4237_s0 + $0x50] ss:$8 sps:$4 sm:$0xff]  }
 0x243   :  { %2685 = vmatpush3.bf16.msra.mxu0 %v2830_v61  ;;  %v2977_v55 = vld [vmem:[%s4237_s0 + $0x64] ss:$8 sps:$4 sm:$0xff]   ;;  %v2985_v61 = vld [vmem:[%s4237_s0 + $0xf0] ss:$8 sps:$4 sm:$0xff]  }
 0x244   :  { %2438 = vmatprep.subr.bf16.mxu1 %v1089_v27  ;;  %v2983_v27 = vld [vmem:[%s4237_s0 + $0xe0] ss:$8 sps:$4 sm:$0xff]  }
 0x245   :  { %2439 = vmatpush3.bf16.msra.mxu1 %v1081_v22  ;;  %v2967_v22 = vld [vmem:[%s4237_s0 + $0x14] ss:$8 sps:$4 sm:$0xff]  }
 0x246   :  { %2440 = vmatprep.subr.bf16.mxu1 %v1090_v31  ;;  %v2971_v31 = vld [vmem:[%s4237_s0 + $0x34] ss:$8 sps:$4 sm:$0xff]  }
 0x249   :  { %2441 = vmatpush3.bf16.msra.mxu1 %v4291_v8 }
 0x24c   :  { %1124 = vmatmul.mubr.bf16.vlgmr.msra.gmra.mrb[48].mxu1 %v2966_v26 }
 0x24d   :  { %1131 = vmatprep.mubr.bf16.mxu1 %v2967_v22 }
 0x254   :  { %1132 = vmatmul.mubr.bf16.gmra.mrb[52].mxu1 %v2968_v52 }
 0x255   :  { %1139 = vmatprep.mubr.bf16.mxu1 %v2969_v2 }
 0x25c   :  { %1140 = vmatmul.mubr.bf16.gmra.mrb[56].mxu1 %v2970_v12 }
 0x25d   :  { %1147 = vmatprep.mubr.bf16.mxu1 %v2971_v31 }
 0x264   :  { %1148 = vmatmul.mubr.bf16.gmra.mrb[60].mxu1 %v2972_v9  ;;  %v3750_v9 = vld [vmem:[%s4243_s6] ss:$0 sm:$0xff] }
 0x265   :  { %1155 = vmatprep.mubr.bf16.mxu1 %v2973_v59 }
 0x26c   :  { %1156 = vmatmul.mubr.bf16.gmra.mrb[64].mxu1 %v2974_v28 }
 0x26d   :  { %1163 = vmatprep.mubr.bf16.mxu1 %v2975_v54 }
 0x274   :  { %1164 = vmatmul.mubr.bf16.gmra.mrb[68].mxu1 %v2976_v47 }
 0x275   :  { %1171 = vmatprep.mubr.bf16.mxu1 %v2977_v55 }
 0x27c   :  { %1172 = vmatmul.mubr.bf16.gmra.mrb[72].mxu1 %v3241_v4  ;;  %v2831_v4 = vld [vmem:[%s4242_s7 + $0x10] sm:$0xff]  }
 0x27d   :  { %1179 = vmatprep.mubr.bf16.mxu1 %v3246_v5  ;;  %2686 = vmatprep.subr.bf16.mxu0 %v2831_v4  ;;  %v2832_v5 = vld [vmem:[%s4242_s7 + $0x18] sm:$0xff]  }
 0x27e   :  { %2687 = vmatpush3.bf16.msra.mxu0 %v2831_v4 }
 0x27f   :  { %2688 = vmatprep.subr.bf16.mxu0 %v2832_v5 }
 0x282   :  { %2689 = vmatpush3.bf16.msra.mxu0 %v2832_v5 }
 0x284   :  { %1180 = vmatmul.mubr.bf16.gmra.mrb[76].mxu1 %v3265_v10  ;;  %v2978_v10 = vld [vmem:[%s4237_s0 + $0xc4] ss:$8 sps:$4 sm:$0xff]  }
 0x285   :  { %1187 = vmatprep.mubr.bf16.mxu1 %v3270_v11  ;;  %v2833_v11 = vld [vmem:[%s4242_s7 + $0x20] sm:$0xff]  }
 0x286   :  { %2690 = vmatprep.subr.bf16.mxu0 %v2833_v11 }
 0x287   :  { %2691 = vmatpush3.bf16.msra.mxu0 %v2833_v11 }
 0x28c   :  { %1188 = vmatmul.mubr.bf16.gmra.mrb[80].mxu1 %v3289_v16  ;;  %v2834_v16 = vld [vmem:[%s4242_s7 + $0x28] sm:$0xff]  }
 0x28d   :  { %1195 = vmatprep.mubr.bf16.mxu1 %v3294_v17  ;;  %2692 = vmatprep.subr.bf16.mxu0 %v2834_v16  ;;  %v2979_v17 = vld [vmem:[%s4237_s0 + $0xc0] ss:$8 sps:$4 sm:$0xff]  }
 0x28e   :  { %2693 = vmatpush3.bf16.msra.mxu0 %v2834_v16 }
 0x294   :  { %1196 = vmatmul.mubr.bf16.gmra.mrb[84].mxu1 %v3301_v18  ;;  %v2980_v18 = vld [vmem:[%s4237_s0 + $0xd4] ss:$8 sps:$4 sm:$0xff]  }
 0x295   :  { %1203 = vmatprep.mubr.bf16.mxu1 %v3306_v19  ;;  %v2835_v19 = vld [vmem:[%s4242_s7 + $0x30] sm:$0xff]  }
 0x296   :  { %2694 = vmatprep.subr.bf16.mxu0 %v2835_v19 }
 0x297   :  { %2695 = vmatpush3.bf16.msra.mxu0 %v2835_v19 }
 0x29c   :  { %1204 = vmatmul.mubr.bf16.gmra.mrb[88].mxu1 %v3313_v20  ;;  %v2836_v20 = vld [vmem:[%s4242_s7 + $0x38] sm:$0xff]  }
 0x29d   :  { %1211 = vmatprep.mubr.bf16.mxu1 %v3318_v21  ;;  %2696 = vmatprep.subr.bf16.mxu0 %v2836_v20  ;;  %v2981_v21 = vld [vmem:[%s4237_s0 + $0xd0] ss:$8 sps:$4 sm:$0xff]  }
 0x29e   :  { %2697 = vmatpush3.bf16.msra.mxu0 %v2836_v20 }
 0x2a4   :  { %1212 = vmatmul.mubr.bf16.gmra.mrb[92].mxu1 %v3331_v24  ;;  %v2982_v24 = vld [vmem:[%s4237_s0 + $0xe4] ss:$8 sps:$4 sm:$0xff]  }
 0x2a5   :  { %1219 = vmatprep.mubr.bf16.mxu1 %v2978_v10 }
 0x2ac   :  { %1220 = vmatmul.mubr.bf16.gmra.mrb[96].mxu1 %v2979_v17 }
 0x2ad   :  { %1227 = vmatprep.mubr.bf16.mxu1 %v2980_v18 }
 0x2b4   :  { %1228 = vmatmul.mubr.bf16.gmra.mrb[100].mxu1 %v2981_v21 }
 0x2b5   :  { %1235 = vmatprep.mubr.bf16.mxu1 %v2982_v24 }
 0x2bc   :  { %1236 = vmatmul.mubr.bf16.gmra.mrb[104].mxu1 %v2983_v27 }
 0x2bd   :  { %1243 = vmatprep.mubr.bf16.mxu1 %v2984_v30 }
 0x2c4   :  { %1244 = vmatmul.mubr.bf16.gmra.mrb[108].mxu1 %v2985_v61 }
 0x31f   :  { %v2442_v8 = vpop.f32.mrb[48].mxu1 }
 0x320   :  { %v2443_v26 = vpop.f32.mrb[49].mxu1 }
 0x321   :  { %v2444_v22 = vadd.f32 %v2443_v26, %v2442_v8  ;;  %v2445_v52 = vpop.f32.mrb[50].mxu1 }
 0x322   :  { %v2446_v2 = vpop.f32.mrb[51].mxu1 }
 0x323   :  { %v1477_v12 = vmul.f32 %v2444_v22, %v3360_v34  ;;  %v2447_v31 = vadd.f32 %v2446_v2, %v2445_v52 }
 0x325   :  { %v1509_v59 = vadd.f32 %v1477_v12, %v3571_v63  ;;  %v1478_v28 = vmul.f32 %v2447_v31, %v3364_v36 }
 0x327   :  { %v1510_v54 = vadd.f32 %v1478_v28, %v3575_v60  ;;  %v2448_v47 = vpop.f32.mrb[52].mxu1  ;;  %v1548_v55 = vadd.f32 %v3750_v9, %v1509_v59 }
 0x328   :  { %v2449_v4 = vpop.f32.mrb[53].mxu1 }
 0x329   :  { %v2450_v5 = vadd.f32 %v2449_v4, %v2448_v47  ;;  %v2451_v10 = vpop.f32.mrb[54].mxu1  ;;  %v1549_v34 = vadd.f32 %v3750_v9, %v1510_v54  ;;  %v1580_v18 = vmax.f32 %v1548_v55, 0.0 }
 0x32a   :  { %v2452_v11 = vpop.f32.mrb[55].mxu1 }
 0x32b   :  { %v1479_v16 = vmul.f32 %v2450_v5, %v3358_v33  ;;  %v2453_v17 = vadd.f32 %v2452_v11, %v2451_v10  ;;  %v1581_v19 = vmax.f32 %v1549_v34, 0.0  ;;  %v4292_v5 = vld [vmem:[#allocation2_spill] sm:$0xff] }
 0x32d   :  { %v1511_v63 = vadd.f32 %v3569_v25, %v1479_v16  ;;  %v1480_v36 = vmul.f32 %v2453_v17, %v3362_v35  ;;  %v1612_v20 = vpack.c.bf16 %v1581_v19, %v1580_v18 }
 0x32f   :  { %v1550_v60 = vadd.f32 %v3750_v9, %v1511_v63  ;;  %v1512_v21 = vadd.f32 %v3573_v62, %v1480_v36  ;;  %v2454_v24 = vpop.f32.mrb[56].mxu1  ;;  %2698 = vmatprep.mubr.bf16.mxu0 %v1612_v20 }
 0x330   :  { %v2455_v27 = vpop.f32.mrb[57].mxu1 }
 0x331   :  { %v1551_v30 = vadd.f32 %v3750_v9, %v1512_v21  ;;  %v2456_v61 = vadd.f32 %v2455_v27, %v2454_v24  ;;  %v2457_v8 = vpop.f32.mrb[58].mxu1  ;;  %v1582_v26 = vmax.f32 %v1550_v60, 0.0 }
 0x332   :  { %v2458_v33 = vpop.f32.mrb[59].mxu1 }
 0x333   :  { %v1583_v22 = vmax.f32 %v1551_v30, 0.0  ;;  %v1481_v52 = vmul.f32 %v2456_v61, %v3368_v38  ;;  %v2459_v25 = vadd.f32 %v2458_v33, %v2457_v8 }
 0x335   :  { %v1613_v2 = vpack.c.bf16 %v1583_v22, %v1582_v26  ;;  %v1513_v35 = vadd.f32 %v1481_v52, %v3581_v6  ;;  %v1482_v12 = vmul.f32 %v2459_v25, %v3366_v37 }
 0x337   :  { %v1514_v62 = vadd.f32 %v1482_v12, %v3586_v57  ;;  %v2460_v31 = vpop.f32.mrb[60].mxu1  ;;  %2699 = vmatmul.mubr.bf16.vlgmr.msra.gmra.mrb[80].mxu0 %v1613_v2  ;;  %v1552_v59 = vadd.f32 %v3750_v9, %v1513_v35 }
 0x338   :  { %v2461_v28 = vpop.f32.mrb[61].mxu1 }
 0x339   :  { %v2462_v54 = vadd.f32 %v2461_v28, %v2460_v31  ;;  %v2463_v47 = vpop.f32.mrb[62].mxu1  ;;  %v1553_v55 = vadd.f32 %v3750_v9, %v1514_v62  ;;  %v1584_v34 = vmax.f32 %v1552_v59, 0.0 }
 0x33a   :  { %v2464_v4 = vpop.f32.mrb[63].mxu1 }
 0x33b   :  { %v1483_v38 = vmul.f32 %v2462_v54, %v4292_v5  ;;  %v2465_v10 = vadd.f32 %v2464_v4, %v2463_v47  ;;  %v1585_v11 = vmax.f32 %v1553_v55, 0.0 }
 0x33d   :  { %v1515_v6 = vadd.f32 %v3579_v7, %v1483_v38  ;;  %v1484_v37 = vmul.f32 %v2465_v10, %v3370_v39  ;;  %v1614_v57 = vpack.c.bf16 %v1585_v11, %v1584_v34 }
 0x33f   :  { %v1516_v16 = vadd.f32 %v3583_v13, %v1484_v37  ;;  %v2466_v17 = vpop.f32.mrb[64].mxu1  ;;  %2702 = vmatprep.mubr.bf16.mxu0 %v1614_v57  ;;  %v1554_v18 = vadd.f32 %v3750_v9, %v1515_v6 }
 0x340   :  { %v2467_v19 = vpop.f32.mrb[65].mxu1 }
 0x341   :  { %v2468_v63 = vadd.f32 %v2467_v19, %v2466_v17  ;;  %v2469_v36 = vpop.f32.mrb[66].mxu1  ;;  %v1555_v20 = vadd.f32 %v3750_v9, %v1516_v16  ;;  %v1586_v27 = vmax.f32 %v1554_v18, 0.0 }
 0x342   :  { %v2470_v60 = vpop.f32.mrb[67].mxu1 }
 0x343   :  { %v1485_v21 = vmul.f32 %v2468_v63, %v3376_v42  ;;  %v2471_v24 = vadd.f32 %v2470_v60, %v2469_v36  ;;  %v1587_v7 = vmax.f32 %v1555_v20, 0.0  ;;  %v4293_v20 = vld [vmem:[#allocation3_spill] sm:$0xff] }
 0x345   :  { %v1517_v39 = vadd.f32 %v1485_v21, %v3592_v14  ;;  %v1486_v30 = vmul.f32 %v2471_v24, %v3374_v41  ;;  %v1615_v13 = vpack.c.bf16 %v1587_v7, %v1586_v27  ;;  %v4294_v21 = vld [vmem:[#allocation20_spill] sm:$0xff] }
 0x347   :  { %v1518_v61 = vadd.f32 %v1486_v30, %v3600_v1  ;;  %v2472_v8 = vpop.f32.mrb[68].mxu1  ;;  %2703 = vmatmul.mubr.bf16.gmra.mrb[84].mxu0 %v1615_v13  ;;  %v1556_v33 = vadd.f32 %v3750_v9, %v1517_v39 }
 0x348   :  { %v2473_v26 = vpop.f32.mrb[69].mxu1 }
 0x349   :  { %v2474_v22 = vadd.f32 %v2473_v26, %v2472_v8  ;;  %v2475_v52 = vpop.f32.mrb[70].mxu1  ;;  %v1557_v25 = vadd.f32 %v3750_v9, %v1518_v61  ;;  %v1588_v12 = vmax.f32 %v1556_v33, 0.0  ;;  %v4295_v8 = vld [vmem:[#allocation5_spill] sm:$0xff] }
 0x34a   :  { %v2476_v42 = vpop.f32.mrb[71].mxu1 }
 0x34b   :  { %v1487_v2 = vmul.f32 %v2474_v22, %v3380_v44  ;;  %v2477_v35 = vadd.f32 %v2476_v42, %v2475_v52  ;;  %v1589_v14 = vmax.f32 %v1557_v25, 0.0  ;;  %v4296_v52 = vld [vmem:[#allocation22_spill] sm:$0xff]  ;;  %v4297_v42 = vld [vmem:[#allocation4_spill] sm:$0xff] }
 0x34d   :  { %v1519_v41 = vadd.f32 %v3590_v40, %v1487_v2  ;;  %v1488_v62 = vmul.f32 %v2477_v35, %v3378_v43  ;;  %v1616_v1 = vpack.c.bf16 %v1589_v14, %v1588_v12 }
 0x34f   :  { %v1520_v31 = vadd.f32 %v3596_v32, %v1488_v62  ;;  %v2478_v59 = vpop.f32.mrb[72].mxu1  ;;  %2706 = vmatprep.mubr.bf16.mxu0 %v1616_v1  ;;  %v1558_v28 = vadd.f32 %v3750_v9, %v1519_v41 }
 0x350   :  { %v2479_v54 = vpop.f32.mrb[73].mxu1 }
 0x351   :  { %v2480_v47 = vadd.f32 %v2479_v54, %v2478_v59  ;;  %v2481_v55 = vpop.f32.mrb[74].mxu1  ;;  %v1559_v4 = vadd.f32 %v3750_v9, %v1520_v31  ;;  %v1590_v10 = vmax.f32 %v1558_v28, 0.0  ;;  %v4298_v54 = vld [vmem:[#allocation7_spill] sm:$0xff] }
 0x352   :  { %v2482_v44 = vpop.f32.mrb[75].mxu1 }
 0x353   :  { %v1489_v5 = vmul.f32 %v2480_v47, %v3384_v46  ;;  %v2483_v38 = vadd.f32 %v2482_v44, %v2481_v55  ;;  %v1591_v40 = vmax.f32 %v1559_v4, 0.0 }
 0x355   :  { %v1521_v43 = vadd.f32 %v1489_v5, %v3606_v29  ;;  %v1490_v34 = vmul.f32 %v2483_v38, %v3382_v45  ;;  %v1617_v32 = vpack.c.bf16 %v1591_v40, %v1590_v10  ;;  %v4299_v5 = vld [vmem:[#allocation21_spill] sm:$0xff]  ;;  %v4300_v10 = vld [vmem:[#allocation6_spill] sm:$0xff] }
 0x357   :  { %v1522_v11 = vadd.f32 %v1490_v34, %v3614_v58  ;;  %v2484_v6 = vpop.f32.mrb[76].mxu1  ;;  %2707 = vmatmul.mubr.bf16.gmra.mrb[88].mxu0 %v1617_v32  ;;  %v1560_v37 = vadd.f32 %v3750_v9, %v1521_v43  ;;  %v4301_v43 = vld [vmem:[#allocation23_spill] sm:$0xff] }
 0x358   :  { %v2485_v57 = vpop.f32.mrb[77].mxu1 }
 0x359   :  { %v2486_v16 = vadd.f32 %v2485_v57, %v2484_v6  ;;  %v2487_v17 = vpop.f32.mrb[78].mxu1  ;;  %v1561_v18 = vadd.f32 %v3750_v9, %v1522_v11  ;;  %v1592_v36 = vmax.f32 %v1560_v37, 0.0 }
 0x35a   :  { %v2488_v46 = vpop.f32.mrb[79].mxu1 }
 0x35b   :  { %v1491_v19 = vmul.f32 %v2486_v16, %v3388_v48  ;;  %v2489_v63 = vadd.f32 %v2488_v46, %v2487_v17  ;;  %v1593_v29 = vmax.f32 %v1561_v18, 0.0  ;;  %v4302_v18 = vld [vmem:[#allocation9_spill] sm:$0xff] }
 0x35d   :  { %v1523_v45 = vadd.f32 %v3604_v23, %v1491_v19  ;;  %v1492_v60 = vmul.f32 %v2489_v63, %v4293_v20  ;;  %v1618_v58 = vpack.c.bf16 %v1593_v29, %v1592_v36  ;;  %v4303_v29 = vld [vmem:[#allocation25_spill] sm:$0xff]  ;;  %v4304_v20 = vld [vmem:[#allocation8_spill] sm:$0xff] }
 0x35f   :  { %v1524_v24 = vadd.f32 %v4294_v21, %v1492_v60  ;;  %v2490_v27 = vpop.f32.mrb[80].mxu1  ;;  %2710 = vmatprep.mubr.bf16.mxu0 %v1618_v58  ;;  %v1562_v7 = vadd.f32 %v3750_v9, %v1523_v45 }
 0x360   :  { %v2491_v39 = vpop.f32.mrb[81].mxu1 }
 0x361   :  { %v2492_v30 = vadd.f32 %v2491_v39, %v2490_v27  ;;  %v2493_v13 = vpop.f32.mrb[82].mxu1  ;;  %v1563_v61 = vadd.f32 %v3750_v9, %v1524_v24  ;;  %v1594_v22 = vmax.f32 %v1562_v7, 0.0 }
 0x362   :  { %v2494_v48 = vpop.f32.mrb[83].mxu1 }
 0x363   :  { %v1493_v33 = vmul.f32 %v2492_v30, %v4295_v8  ;;  %v2495_v26 = vadd.f32 %v2494_v48, %v2493_v13  ;;  %v1595_v23 = vmax.f32 %v1563_v61, 0.0  ;;  %v4305_v48 = vld [vmem:[#allocation11_spill] sm:$0xff] }
 0x365   :  { %v1525_v25 = vadd.f32 %v1493_v33, %v4296_v52  ;;  %v1494_v2 = vmul.f32 %v2495_v26, %v4297_v42  ;;  %v1619_v35 = vpack.c.bf16 %v1595_v23, %v1594_v22  ;;  %v4306_v23 = vld [vmem:[#allocation24_spill] sm:$0xff] }
 0x367   :  { %v1526_v12 = vadd.f32 %v1494_v2, %v3622_v49  ;;  %v2496_v14 = vpop.f32.mrb[84].mxu1  ;;  %2711 = vmatmul.mubr.bf16.gmra.mrb[92].mxu0 %v1619_v35  ;;  %v1564_v41 = vadd.f32 %v3750_v9, %v1525_v25  ;;  %v4307_v25 = vld [vmem:[#allocation10_spill] sm:$0xff] }
 0x368   :  { %v2497_v62 = vpop.f32.mrb[85].mxu1 }
 0x369   :  { %v2498_v1 = vadd.f32 %v2497_v62, %v2496_v14  ;;  %v2499_v31 = vpop.f32.mrb[86].mxu1  ;;  %v1565_v59 = vadd.f32 %v3750_v9, %v1526_v12  ;;  %v1596_v4 = vmax.f32 %v1564_v41, 0.0 }
 0x36a   :  { %v2500_v28 = vpop.f32.mrb[87].mxu1 }
 0x36b   :  { %v1495_v47 = vmul.f32 %v2498_v1, %v4298_v54  ;;  %v2501_v55 = vadd.f32 %v2500_v28, %v2499_v31  ;;  %v1597_v44 = vmax.f32 %v1565_v59, 0.0  ;;  %v4308_v59 = vld [vmem:[#allocation13_spill] sm:$0xff] }
 0x36d   :  { %v1527_v38 = vadd.f32 %v4299_v5, %v1495_v47  ;;  %v1496_v40 = vmul.f32 %v2501_v55, %v4300_v10  ;;  %v1620_v49 = vpack.c.bf16 %v1597_v44, %v1596_v4  ;;  %v4309_v4 = vld [vmem:[#allocation27_spill] sm:$0xff]  ;;  %v4310_v5 = vld [vmem:[#allocation12_spill] sm:$0xff] }
 0x36f   :  { %v1528_v34 = vadd.f32 %v4301_v43, %v1496_v40  ;;  %v2502_v32 = vpop.f32.mrb[88].mxu1  ;;  %2714 = vmatprep.mubr.bf16.mxu0 %v1620_v49  ;;  %v1566_v11 = vadd.f32 %v3750_v9, %v1527_v38 }
 0x370   :  { %v2503_v6 = vpop.f32.mrb[89].mxu1 }
 0x371   :  { %v2504_v37 = vadd.f32 %v2503_v6, %v2502_v32  ;;  %v2505_v57 = vpop.f32.mrb[90].mxu1  ;;  %v1567_v16 = vadd.f32 %v3750_v9, %v1528_v34  ;;  %v1598_v63 = vmax.f32 %v1566_v11, 0.0 }
 0x372   :  { %v2506_v17 = vpop.f32.mrb[91].mxu1 }
 0x373   :  { %v1497_v46 = vmul.f32 %v2504_v37, %v4302_v18  ;;  %v2507_v19 = vadd.f32 %v2506_v17, %v2505_v57  ;;  %v1599_v36 = vmax.f32 %v1567_v16, 0.0  ;;  %v4311_v37 = vld [vmem:[#allocation15_spill] sm:$0xff] }
 0x375   :  { %v1529_v45 = vadd.f32 %v1497_v46, %v4303_v29  ;;  %v1498_v60 = vmul.f32 %v2507_v19, %v4304_v20  ;;  %v1621_v58 = vpack.c.bf16 %v1599_v36, %v1598_v63  ;;  %v4312_v46 = vld [vmem:[#allocation26_spill] sm:$0xff]  ;;  %v4314_v29 = vld [vmem:[#allocation28_spill] sm:$0xff] }
 0x376   :  { %v4313_v63 = vld [vmem:[#allocation14_spill] sm:$0xff] }
 0x377   :  { %v1530_v21 = vadd.f32 %v1498_v60, %v3630_v53  ;;  %v2508_v24 = vpop.f32.mrb[92].mxu1  ;;  %2715 = vmatmul.mubr.bf16.gmra.mrb[96].mxu0 %v1621_v58  ;;  %v1568_v27 = vadd.f32 %v3750_v9, %v1529_v45 }
 0x378   :  { %v2509_v7 = vpop.f32.mrb[93].mxu1 }
 0x379   :  { %v2510_v39 = vadd.f32 %v2509_v7, %v2508_v24  ;;  %v2511_v30 = vpop.f32.mrb[94].mxu1  ;;  %v1569_v13 = vadd.f32 %v3750_v9, %v1530_v21  ;;  %v1600_v26 = vmax.f32 %v1568_v27, 0.0 }
 0x37a   :  { %v2512_v61 = vpop.f32.mrb[95].mxu1 }
 0x37b   :  { %v1499_v8 = vmul.f32 %v2510_v39, %v4305_v48  ;;  %v2513_v33 = vadd.f32 %v2512_v61, %v2511_v30  ;;  %v1601_v22 = vmax.f32 %v1569_v13, 0.0  ;;  %v4315_v39 = vld [vmem:[#allocation17_spill] sm:$0xff] }
 0x37d   :  { %v1531_v52 = vadd.f32 %v4306_v23, %v1499_v8  ;;  %v1500_v42 = vmul.f32 %v2513_v33, %v4307_v25  ;;  %v1622_v53 = vpack.c.bf16 %v1601_v22, %v1600_v26  ;;  %v4316_v33 = vld [vmem:[#allocation16_spill] sm:$0xff] }
 0x37f   :  { %v1532_v2 = vadd.f32 %v3628_v56, %v1500_v42  ;;  %v2514_v35 = vpop.f32.mrb[96].mxu1  ;;  %2718 = vmatprep.mubr.bf16.mxu0 %v1622_v53  ;;  %v1570_v12 = vadd.f32 %v3750_v9, %v1531_v52 }
 0x380   :  { %v2515_v14 = vpop.f32.mrb[97].mxu1 }
 0x381   :  { %v2516_v41 = vadd.f32 %v2515_v14, %v2514_v35  ;;  %v2517_v62 = vpop.f32.mrb[98].mxu1  ;;  %v1571_v1 = vadd.f32 %v3750_v9, %v1532_v2  ;;  %v1602_v47 = vmax.f32 %v1570_v12, 0.0  ;;  %v4317_v14 = vld [vmem:[#allocation19_spill] sm:$0xff] }
 0x382   :  { %v2518_v31 = vpop.f32.mrb[99].mxu1 }
 0x383   :  { %v1501_v28 = vmul.f32 %v2516_v41, %v4308_v59  ;;  %v2519_v54 = vadd.f32 %v2518_v31, %v2517_v62  ;;  %v1603_v55 = vmax.f32 %v1571_v1, 0.0  ;;  %v4318_v59 = vld [vmem:[#allocation18_spill] sm:$0xff] }
 0x385   :  { %v1533_v44 = vadd.f32 %v1501_v28, %v4309_v4  ;;  %v1502_v38 = vmul.f32 %v2519_v54, %v4310_v5  ;;  %v1623_v56 = vpack.c.bf16 %v1603_v55, %v1602_v47 }
 0x387   :  { %v1534_v10 = vadd.f32 %v1502_v38, %v3638_v3  ;;  %v2520_v40 = vpop.f32.mrb[100].mxu1  ;;  %2719 = vmatmul.mubr.bf16.gmra.mrb[100].mxu0 %v1623_v56  ;;  %v1572_v49 = vadd.f32 %v3750_v9, %v1533_v44  ;;  %v3850_v38 = vld [vmem:[%s4244_s8] ss:$0 sm:$0xff] }
 0x388   :  { %v2521_v43 = vpop.f32.mrb[101].mxu1 }
 0x389   :  { %v2522_v34 = vadd.f32 %v2521_v43, %v2520_v40  ;;  %v2523_v32 = vpop.f32.mrb[102].mxu1  ;;  %v1573_v11 = vadd.f32 %v3750_v9, %v1534_v10  ;;  %v1604_v17 = vmax.f32 %v1572_v49, 0.0 }
 0x38a   :  { %v2524_v6 = vpop.f32.mrb[103].mxu1 }
 0x38b   :  { %v1503_v57 = vmul.f32 %v2522_v34, %v4311_v37  ;;  %v2525_v16 = vadd.f32 %v2524_v6, %v2523_v32  ;;  %v1605_v18 = vmax.f32 %v1573_v11, 0.0 }
 0x38d   :  { %v1535_v19 = vadd.f32 %v4312_v46, %v1503_v57  ;;  %v1504_v36 = vmul.f32 %v2525_v16, %v4313_v63  ;;  %v1624_v3 = vpack.c.bf16 %v1605_v18, %v1604_v17 }
 0x38f   :  { %v1536_v45 = vadd.f32 %v4314_v29, %v1504_v36  ;;  %v2526_v20 = vpop.f32.mrb[104].mxu1  ;;  %2722 = vmatprep.mubr.bf16.mxu0 %v1624_v3  ;;  %v1574_v60 = vadd.f32 %v3750_v9, %v1535_v19 }
 0x390   :  { %v2527_v58 = vpop.f32.mrb[105].mxu1 }
 0x391   :  { %v2528_v21 = vadd.f32 %v2527_v58, %v2526_v20  ;;  %v2529_v24 = vpop.f32.mrb[106].mxu1  ;;  %v1575_v27 = vadd.f32 %v3750_v9, %v1536_v45  ;;  %v1606_v61 = vmax.f32 %v1574_v60, 0.0 }
 0x392   :  { %v2530_v7 = vpop.f32.mrb[107].mxu1 }
 0x393   :  { %v1505_v30 = vmul.f32 %v2528_v21, %v4315_v39  ;;  %v2531_v13 = vadd.f32 %v2530_v7, %v2529_v24  ;;  %v1607_v48 = vmax.f32 %v1575_v27, 0.0 }
 0x395   :  { %v1537_v8 = vadd.f32 %v1505_v30, %v3642_v0  ;;  %v1506_v26 = vmul.f32 %v2531_v13, %v4316_v33  ;;  %v1625_v22 = vpack.c.bf16 %v1607_v48, %v1606_v61 }
 0x397   :  { %v1538_v23 = vadd.f32 %v1506_v26, %v3646_v50  ;;  %v2532_v52 = vpop.f32.mrb[108].mxu1  ;;  %2723 = vmatmul.mubr.bf16.gmra.mrb[104].mxu0 %v1625_v22  ;;  %v1576_v25 = vadd.f32 %v3750_v9, %v1537_v8 }
 0x398   :  { %v2533_v42 = vpop.f32.mrb[109].mxu1 }
 0x399   :  { %v2534_v53 = vadd.f32 %v2533_v42, %v2532_v52  ;;  %v2535_v2 = vpop.f32.mrb[110].mxu1  ;;  %v1577_v35 = vadd.f32 %v3750_v9, %v1538_v23  ;;  %v1608_v1 = vmax.f32 %v1576_v25, 0.0 }
 0x39a   :  { %v2536_v12 = vpop.f32.mrb[111].mxu1 }
 0x39b   :  { %v1507_v41 = vmul.f32 %v2534_v53, %v4317_v14  ;;  %v2537_v62 = vadd.f32 %v2536_v12, %v2535_v2  ;;  %v1609_v0 = vmax.f32 %v1577_v35, 0.0 }
 0x39d   :  { %v1539_v31 = vadd.f32 %v3640_v15, %v1507_v41  ;;  %v1508_v28 = vmul.f32 %v2537_v62, %v4318_v59  ;;  %v1626_v50 = vpack.c.bf16 %v1609_v0, %v1608_v1 }
 0x39f   :  { %v1540_v54 = vadd.f32 %v3644_v51, %v1508_v28  ;;  %2726 = vmatprep.mubr.bf16.mxu0 %v1626_v50  ;;  %v1578_v47 = vadd.f32 %v3750_v9, %v1539_v31 }
 0x3a1   :  { %v1579_v55 = vadd.f32 %v3750_v9, %v1540_v54  ;;  %v1610_v4 = vmax.f32 %v1578_v47, 0.0 }
 0x3a3   :  { %v1611_v44 = vmax.f32 %v1579_v55, 0.0 }
 0x3a5   :  { %v1627_v5 = vpack.c.bf16 %v1611_v44, %v1610_v4 }
 0x3a7   :  { %2727 = vmatmul.mubr.bf16.gmra.mrb[108].mxu0 %v1627_v5 }
 0x40a   :  { %v2700_v15 = vpop.f32.mrb[80].mxu0 }
 0x40b   :  { %v3853_v56 = vadd.f32 %v2700_v15, %v3850_v38  ;;  %v1733_v10 = vpop.f32.mrb[81].mxu0 }
 0x40c   :  { %v2701_v51 = vpop.f32.mrb[82].mxu0  ;;  %v3860_v49 = vadd.f32 %v3850_v38, %v1733_v10 }
 0x40d   :  { %1864 = vmax.xlane.f32.xlu0 %v3853_v56  ;;  %v1736_v40 = vpop.f32.mrb[83].mxu0  ;;  %v3865_v43 = vadd.f32 %v2701_v51, %v3850_v38 }
 0x40e   :  { %v3857_v9 = vadd.f32 %v3850_v38, %v1736_v40 }
 0x410   :  { %1862 = vmax.xlane.f32.xlu1 %v3857_v9 }
 0x411   :  { %1860 = vmax.xlane.f32.xlu0 %v3860_v49 }
 0x415   :  { %1866 = vmax.xlane.f32.xlu0 %v3865_v43 }
 0x41a   :  { %v2704_v34 = vpop.f32.mrb[84].mxu0 }
 0x41b   :  { %v3869_v32 = vadd.f32 %v2704_v34, %v3850_v38  ;;  %v1749_v11 = vpop.f32.mrb[85].mxu0 }
 0x41c   :  { %v2705_v6 = vpop.f32.mrb[86].mxu0  ;;  %v3876_v16 = vadd.f32 %v3850_v38, %v1749_v11 }
 0x41d   :  { %v3872_v37 = vadd.f32 %v2705_v6, %v3850_v38  ;;  %v1752_v57 = vpop.f32.mrb[87].mxu0  ;;  %1872 = vmax.xlane.f32.xlu1 %v3869_v32 }
 0x41e   :  { %v3880_v17 = vadd.f32 %v3850_v38, %v1752_v57 }
 0x41f   :  { %1874 = vmax.xlane.f32.xlu0 %v3872_v37 }
 0x421   :  { %1868 = vmax.xlane.f32.xlu1 %v3876_v16 }
 0x423   :  { %1870 = vmax.xlane.f32.xlu0 %v3880_v17 }
 0x42a   :  { %v2708_v18 = vpop.f32.mrb[88].mxu0 }
 0x42b   :  { %v3885_v46 = vadd.f32 %v2708_v18, %v3850_v38  ;;  %v1765_v19 = vpop.f32.mrb[89].mxu0 }
 0x42c   :  { %v2709_v63 = vpop.f32.mrb[90].mxu0  ;;  %v3892_v29 = vadd.f32 %v3850_v38, %v1765_v19 }
 0x42d   :  { %v3888_v36 = vadd.f32 %v2709_v63, %v3850_v38  ;;  %v1768_v3 = vpop.f32.mrb[91].mxu0  ;;  %1880 = vmax.xlane.f32.xlu1 %v3885_v46 }
 0x42e   :  { %v3896_v45 = vadd.f32 %v3850_v38, %v1768_v3 }
 0x42f   :  { %1882 = vmax.xlane.f32.xlu0 %v3888_v36 }
 0x431   :  { %1876 = vmax.xlane.f32.xlu1 %v3892_v29 }
 0x433   :  { %1878 = vmax.xlane.f32.xlu0 %v3896_v45 }
 0x43a   :  { %v2712_v20 = vpop.f32.mrb[92].mxu0 }
 0x43b   :  { %v3901_v60 = vadd.f32 %v2712_v20, %v3850_v38  ;;  %v1781_v58 = vpop.f32.mrb[93].mxu0 }
 0x43c   :  { %v2713_v21 = vpop.f32.mrb[94].mxu0  ;;  %v3908_v7 = vadd.f32 %v3850_v38, %v1781_v58 }
 0x43d   :  { %v3904_v24 = vadd.f32 %v2713_v21, %v3850_v38  ;;  %v1784_v27 = vpop.f32.mrb[95].mxu0  ;;  %1888 = vmax.xlane.f32.xlu1 %v3901_v60 }
 0x43e   :  { %v3912_v39 = vadd.f32 %v3850_v38, %v1784_v27 }
 0x43f   :  { %1890 = vmax.xlane.f32.xlu0 %v3904_v24 }
 0x441   :  { %1884 = vmax.xlane.f32.xlu1 %v3908_v7 }
 0x443   :  { %1886 = vmax.xlane.f32.xlu0 %v3912_v39 }
 0x44a   :  { %v2716_v30 = vpop.f32.mrb[96].mxu0 }
 0x44b   :  { %v3917_v13 = vadd.f32 %v2716_v30, %v3850_v38  ;;  %v1797_v61 = vpop.f32.mrb[97].mxu0 }
 0x44c   :  { %v2717_v48 = vpop.f32.mrb[98].mxu0  ;;  %v3924_v26 = vadd.f32 %v3850_v38, %v1797_v61 }
 0x44d   :  { %v3920_v8 = vadd.f32 %v2717_v48, %v3850_v38  ;;  %v1800_v33 = vpop.f32.mrb[99].mxu0  ;;  %1896 = vmax.xlane.f32.xlu1 %v3917_v13 }
 0x44e   :  { %v3928_v22 = vadd.f32 %v3850_v38, %v1800_v33 }
 0x44f   :  { %1898 = vmax.xlane.f32.xlu0 %v3920_v8 }
 0x451   :  { %1892 = vmax.xlane.f32.xlu1 %v3924_v26 }
 0x453   :  { %1894 = vmax.xlane.f32.xlu0 %v3928_v22 }
 0x45a   :  { %v2720_v23 = vpop.f32.mrb[100].mxu0 }
 0x45b   :  { %v3933_v52 = vadd.f32 %v2720_v23, %v3850_v38  ;;  %v1813_v25 = vpop.f32.mrb[101].mxu0 }
 0x45c   :  { %v2721_v42 = vpop.f32.mrb[102].mxu0  ;;  %v3940_v35 = vadd.f32 %v3850_v38, %v1813_v25 }
 0x45d   :  { %v3936_v53 = vadd.f32 %v2721_v42, %v3850_v38  ;;  %v1816_v2 = vpop.f32.mrb[103].mxu0  ;;  %1904 = vmax.xlane.f32.xlu1 %v3933_v52 }
 0x45e   :  { %v3944_v12 = vadd.f32 %v3850_v38, %v1816_v2 }
 0x45f   :  { %1906 = vmax.xlane.f32.xlu0 %v3936_v53 }
 0x461   :  { %1900 = vmax.xlane.f32.xlu1 %v3940_v35 }
 0x463   :  { %1902 = vmax.xlane.f32.xlu0 %v3944_v12 }
 0x46a   :  { %v2724_v14 = vpop.f32.mrb[104].mxu0 }
 0x46b   :  { %v3949_v41 = vadd.f32 %v2724_v14, %v3850_v38  ;;  %v1829_v62 = vpop.f32.mrb[105].mxu0 }
 0x46c   :  { %v2725_v1 = vpop.f32.mrb[106].mxu0  ;;  %v3956_v59 = vadd.f32 %v3850_v38, %v1829_v62 }
 0x46d   :  { %v3952_v0 = vadd.f32 %v2725_v1, %v3850_v38  ;;  %v1832_v31 = vpop.f32.mrb[107].mxu0  ;;  %1912 = vmax.xlane.f32.xlu1 %v3949_v41 }
 0x46e   :  { %v3960_v28 = vadd.f32 %v3850_v38, %v1832_v31 }
 0x46f   :  { %1914 = vmax.xlane.f32.xlu0 %v3952_v0 }
 0x471   :  { %1908 = vmax.xlane.f32.xlu1 %v3956_v59 }
 0x473   :  { %1910 = vmax.xlane.f32.xlu0 %v3960_v28 }
 0x47a   :  { %v2728_v50 = vpop.f32.mrb[108].mxu0 }
 0x47b   :  { %v1845_v54 = vpop.f32.mrb[109].mxu0  ;;  %v3972_v5 = vadd.f32 %v2728_v50, %v3850_v38 }
 0x47c   :  { %v3965_v47 = vadd.f32 %v3850_v38, %v1845_v54  ;;  %v2729_v55 = vpop.f32.mrb[110].mxu0 }
 0x47d   :  { %v1848_v4 = vpop.f32.mrb[111].mxu0  ;;  %v3976_v15 = vadd.f32 %v2729_v55, %v3850_v38 }
 0x47e   :  { %v3968_v44 = vadd.f32 %v3850_v38, %v1848_v4  ;;  %1916 = vmax.xlane.f32.xlu1 %v3965_v47 }
 0x480   :  { %1918 = vmax.xlane.f32.xlu0 %v3968_v44 }
 0x482   :  { %1920 = vmax.xlane.f32.xlu1 %v3972_v5 }
 0x484   :  { %1922 = vmax.xlane.f32.xlu0 %v3976_v15 }
 0x49a   :  { %v1865_v10 = vpop.xlane.xlu0 %1864 }
 0x49b   :  { %v3981_v51 = vsub.f32 %v3853_v56, %v1865_v10 }
 0x49d   :  { %v1960_v40 = vmul.f32 1.442695, %v3981_v51  ;;  %v1863_v6 = vpop.xlane.xlu1 %1862 }
 0x49e   :  { %v1861_v34 = vpop.xlane.xlu0 %1860  ;;  %v3989_v18 = vsub.f32 %v3857_v9, %v1863_v6 }
 0x49f   :  { %2837 = vpow2.f32 %v1960_v40  ;;  %v3985_v11 = vsub.f32 %v3860_v49, %v1861_v34 }
 0x4a0   :  { %v1958_v63 = vmul.f32 1.442695, %v3989_v18 }
 0x4a1   :  { %v1956_v57 = vmul.f32 1.442695, %v3985_v11 }
 0x4a2   :  { %v1867_v38 = vpop.xlane.xlu0 %1866 }
 0x4a3   :  { %2839 = vpow2.f32 %v1956_v57  ;;  %v3992_v19 = vsub.f32 %v3865_v43, %v1867_v38 }
 0x4a5   :  { %v1962_v56 = vmul.f32 1.442695, %v3992_v19 }
 0x4a7   :  { %2841 = vpow2.f32 %v1962_v56 }
 0x4a8   :  { %2843 = vpow2.f32 %v1958_v63 }
 0x4a9   :  { %v2838_v3 = vpop.eup %2837 }
 0x4aa   :  { %2024 = vadd.xlane.f32.xlu1 %v2838_v3  ;;  %v1873_v49 = vpop.xlane.xlu1 %1872 }
 0x4ab   :  { %v3997_v20 = vsub.f32 %v3869_v32, %v1873_v49 }
 0x4ac   :  { %v1875_v58 = vpop.xlane.xlu0 %1874 }
 0x4ad   :  { %v2840_v21 = vpop.eup %2839  ;;  %v1968_v9 = vmul.f32 1.442695, %v3997_v20  ;;  %v4001_v27 = vsub.f32 %v3872_v37, %v1875_v58 }
 0x4ae   :  { %v1869_v43 = vpop.xlane.xlu1 %1868  ;;  %2020 = vadd.xlane.f32.xlu1 %v2840_v21 }
 0x4af   :  { %2845 = vpow2.f32 %v1968_v9  ;;  %v1970_v30 = vmul.f32 1.442695, %v4001_v27  ;;  %v4005_v61 = vsub.f32 %v3876_v16, %v1869_v43 }
 0x4b0   :  { %v1871_v48 = vpop.xlane.xlu0 %1870 }
 0x4b1   :  { %v2842_v33 = vpop.eup %2841  ;;  %2847 = vpow2.f32 %v1970_v30  ;;  %v1964_v32 = vmul.f32 1.442695, %v4005_v61  ;;  %v4009_v23 = vsub.f32 %v3880_v17, %v1871_v48 }
 0x4b2   :  { %2026 = vadd.xlane.f32.xlu0 %v2842_v33  ;;  %v2844_v25 = vpop.eup %2843 }
 0x4b3   :  { %2849 = vpow2.f32 %v1964_v32  ;;  %v1966_v37 = vmul.f32 1.442695, %v4009_v23 }
 0x4b5   :  { %2851 = vpow2.f32 %v1966_v37 }
 0x4b6   :  { %2022 = vadd.xlane.f32.xlu0 %v2844_v25 }
 0x4b9   :  { %v2846_v42 = vpop.eup %2845 }
 0x4ba   :  { %v1881_v2 = vpop.xlane.xlu1 %1880  ;;  %2032 = vadd.xlane.f32.xlu1 %v2846_v42 }
 0x4bb   :  { %v2848_v16 = vpop.eup %2847  ;;  %v4013_v14 = vsub.f32 %v3885_v46, %v1881_v2 }
 0x4bc   :  { %2034 = vadd.xlane.f32.xlu0 %v2848_v16  ;;  %v1883_v62 = vpop.xlane.xlu0 %1882 }
 0x4bd   :  { %v2850_v1 = vpop.eup %2849  ;;  %v1976_v17 = vmul.f32 1.442695, %v4013_v14  ;;  %v4017_v31 = vsub.f32 %v3888_v36, %v1883_v62 }
 0x4be   :  { %v1877_v50 = vpop.xlane.xlu1 %1876  ;;  %2028 = vadd.xlane.f32.xlu1 %v2850_v1 }
 0x4bf   :  { %v2852_v54 = vpop.eup %2851  ;;  %2853 = vpow2.f32 %v1976_v17  ;;  %v1978_v55 = vmul.f32 1.442695, %v4017_v31  ;;  %v4021_v4 = vsub.f32 %v3892_v29, %v1877_v50 }
 0x4c0   :  { %2030 = vadd.xlane.f32.xlu0 %v2852_v54  ;;  %v1879_v46 = vpop.xlane.xlu0 %1878 }
 0x4c1   :  { %2855 = vpow2.f32 %v1978_v55  ;;  %v1972_v10 = vmul.f32 1.442695, %v4021_v4  ;;  %v4025_v40 = vsub.f32 %v3896_v45, %v1879_v46 }
 0x4c3   :  { %2857 = vpow2.f32 %v1972_v10  ;;  %v1974_v36 = vmul.f32 1.442695, %v4025_v40 }
 0x4c5   :  { %2859 = vpow2.f32 %v1974_v36 }
 0x4c9   :  { %v2854_v34 = vpop.eup %2853 }
 0x4ca   :  { %v1889_v6 = vpop.xlane.xlu1 %1888  ;;  %2040 = vadd.xlane.f32.xlu1 %v2854_v34 }
 0x4cb   :  { %v2856_v57 = vpop.eup %2855  ;;  %v4029_v38 = vsub.f32 %v3901_v60, %v1889_v6 }
 0x4cc   :  { %2042 = vadd.xlane.f32.xlu0 %v2856_v57  ;;  %v1891_v29 = vpop.xlane.xlu0 %1890 }
 0x4cd   :  { %v2858_v56 = vpop.eup %2857  ;;  %v1984_v63 = vmul.f32 1.442695, %v4029_v38  ;;  %v4033_v3 = vsub.f32 %v3904_v24, %v1891_v29 }
 0x4ce   :  { %v1885_v45 = vpop.xlane.xlu1 %1884  ;;  %2036 = vadd.xlane.f32.xlu1 %v2858_v56 }
 0x4cf   :  { %v2860_v49 = vpop.eup %2859  ;;  %2861 = vpow2.f32 %v1984_v63  ;;  %v1986_v58 = vmul.f32 1.442695, %v4033_v3  ;;  %v4037_v21 = vsub.f32 %v3908_v7, %v1885_v45 }
 0x4d0   :  { %2038 = vadd.xlane.f32.xlu0 %v2860_v49  ;;  %v1887_v60 = vpop.xlane.xlu0 %1886 }
 0x4d1   :  { %2863 = vpow2.f32 %v1986_v58  ;;  %v1980_v9 = vmul.f32 1.442695, %v4037_v21  ;;  %v4041_v43 = vsub.f32 %v3912_v39, %v1887_v60 }
 0x4d3   :  { %2865 = vpow2.f32 %v1980_v9  ;;  %v1982_v24 = vmul.f32 1.442695, %v4041_v43 }
 0x4d5   :  { %2867 = vpow2.f32 %v1982_v24 }
 0x4d9   :  { %v2862_v30 = vpop.eup %2861 }
 0x4da   :  { %v1897_v48 = vpop.xlane.xlu1 %1896  ;;  %2048 = vadd.xlane.f32.xlu1 %v2862_v30 }
 0x4db   :  { %v2864_v33 = vpop.eup %2863  ;;  %v4045_v32 = vsub.f32 %v3917_v13, %v1897_v48 }
 0x4dc   :  { %2050 = vadd.xlane.f32.xlu0 %v2864_v33  ;;  %v1899_v7 = vpop.xlane.xlu0 %1898 }
 0x4dd   :  { %v2866_v37 = vpop.eup %2865  ;;  %v1992_v25 = vmul.f32 1.442695, %v4045_v32  ;;  %v4049_v42 = vsub.f32 %v3920_v8, %v1899_v7 }
 0x4de   :  { %v1893_v39 = vpop.xlane.xlu1 %1892  ;;  %2044 = vadd.xlane.f32.xlu1 %v2866_v37 }
 0x4df   :  { %v2868_v2 = vpop.eup %2867  ;;  %2869 = vpow2.f32 %v1992_v25  ;;  %v1994_v16 = vmul.f32 1.442695, %v4049_v42  ;;  %v4053_v62 = vsub.f32 %v3924_v26, %v1893_v39 }
 0x4e0   :  { %2046 = vadd.xlane.f32.xlu0 %v2868_v2  ;;  %v1895_v13 = vpop.xlane.xlu0 %1894 }
 0x4e1   :  { %2871 = vpow2.f32 %v1994_v16  ;;  %v1988_v1 = vmul.f32 1.442695, %v4053_v62  ;;  %v4057_v17 = vsub.f32 %v3928_v22, %v1895_v13 }
 0x4e3   :  { %2873 = vpow2.f32 %v1988_v1  ;;  %v1990_v8 = vmul.f32 1.442695, %v4057_v17 }
 0x4e5   :  { %2875 = vpow2.f32 %v1990_v8 }
 0x4e9   :  { %v2870_v50 = vpop.eup %2869 }
 0x4ea   :  { %v1905_v54 = vpop.xlane.xlu1 %1904  ;;  %2056 = vadd.xlane.f32.xlu1 %v2870_v50 }
 0x4eb   :  { %v2872_v55 = vpop.eup %2871  ;;  %v4061_v46 = vsub.f32 %v3933_v52, %v1905_v54 }
 0x4ec   :  { %2058 = vadd.xlane.f32.xlu0 %v2872_v55  ;;  %v1907_v26 = vpop.xlane.xlu0 %1906 }
 0x4ed   :  { %v2874_v10 = vpop.eup %2873  ;;  %v2000_v36 = vmul.f32 1.442695, %v4061_v46  ;;  %v4065_v34 = vsub.f32 %v3936_v53, %v1907_v26 }
 0x4ee   :  { %v1901_v22 = vpop.xlane.xlu1 %1900  ;;  %2052 = vadd.xlane.f32.xlu1 %v2874_v10 }
 0x4ef   :  { %v2876_v6 = vpop.eup %2875  ;;  %2877 = vpow2.f32 %v2000_v36  ;;  %v2002_v57 = vmul.f32 1.442695, %v4065_v34  ;;  %v4069_v29 = vsub.f32 %v3940_v35, %v1901_v22 }
 0x4f0   :  { %2054 = vadd.xlane.f32.xlu0 %v2876_v6  ;;  %v1903_v52 = vpop.xlane.xlu0 %1902 }
 0x4f1   :  { %2879 = vpow2.f32 %v2002_v57  ;;  %v1996_v56 = vmul.f32 1.442695, %v4069_v29  ;;  %v4073_v63 = vsub.f32 %v3944_v12, %v1903_v52 }
 0x4f3   :  { %2881 = vpow2.f32 %v1996_v56  ;;  %v1998_v53 = vmul.f32 1.442695, %v4073_v63 }
 0x4f5   :  { %2883 = vpow2.f32 %v1998_v53 }
 0x4f9   :  { %v2878_v45 = vpop.eup %2877 }
 0x4fa   :  { %v1913_v49 = vpop.xlane.xlu1 %1912  ;;  %2064 = vadd.xlane.f32.xlu1 %v2878_v45 }
 0x4fb   :  { %v2880_v58 = vpop.eup %2879  ;;  %v4077_v60 = vsub.f32 %v3949_v41, %v1913_v49 }
 0x4fc   :  { %2066 = vadd.xlane.f32.xlu0 %v2880_v58  ;;  %v1915_v35 = vpop.xlane.xlu0 %1914 }
 0x4fd   :  { %v2882_v9 = vpop.eup %2881  ;;  %v2008_v24 = vmul.f32 1.442695, %v4077_v60  ;;  %v4081_v30 = vsub.f32 %v3952_v0, %v1915_v35 }
 0x4fe   :  { %v1909_v12 = vpop.xlane.xlu1 %1908  ;;  %2060 = vadd.xlane.f32.xlu1 %v2882_v9 }
 0x4ff   :  { %v2884_v48 = vpop.eup %2883  ;;  %2885 = vpow2.f32 %v2008_v24  ;;  %v2010_v33 = vmul.f32 1.442695, %v4081_v30  ;;  %v4085_v7 = vsub.f32 %v3956_v59, %v1909_v12 }
 0x500   :  { %2062 = vadd.xlane.f32.xlu0 %v2884_v48  ;;  %v1911_v41 = vpop.xlane.xlu0 %1910 }
 0x501   :  { %2887 = vpow2.f32 %v2010_v33  ;;  %v2004_v37 = vmul.f32 1.442695, %v4085_v7  ;;  %v4089_v25 = vsub.f32 %v3960_v28, %v1911_v41 }
 0x503   :  { %2889 = vpow2.f32 %v2004_v37  ;;  %v2006_v0 = vmul.f32 1.442695, %v4089_v25 }
 0x505   :  { %2891 = vpow2.f32 %v2006_v0 }
 0x509   :  { %v2886_v39 = vpop.eup %2885 }
 0x50a   :  { %2072 = vadd.xlane.f32.xlu1 %v2886_v39 }
 0x50b   :  { %v2888_v2 = vpop.eup %2887  ;;  %v1917_v16 = vpop.xlane.xlu1 %1916 }
 0x50c   :  { %v4093_v13 = vsub.f32 %v3965_v47, %v1917_v16  ;;  %2074 = vadd.xlane.f32.xlu0 %v2888_v2 }
 0x50d   :  { %v2890_v59 = vpop.eup %2889  ;;  %v1919_v1 = vpop.xlane.xlu0 %1918 }
 0x50e   :  { %v2012_v8 = vmul.f32 1.442695, %v4093_v13  ;;  %v4097_v50 = vsub.f32 %v3968_v44, %v1919_v1  ;;  %2068 = vadd.xlane.f32.xlu1 %v2890_v59 }
 0x50f   :  { %v2892_v28 = vpop.eup %2891  ;;  %v1921_v54 = vpop.xlane.xlu1 %1920 }
 0x510   :  { %2893 = vpow2.f32 %v2012_v8  ;;  %v2014_v55 = vmul.f32 1.442695, %v4097_v50  ;;  %v4101_v26 = vsub.f32 %v3972_v5, %v1921_v54  ;;  %2070 = vadd.xlane.f32.xlu0 %v2892_v28 }
 0x511   :  { %v1923_v47 = vpop.xlane.xlu0 %1922 }
 0x512   :  { %2895 = vpow2.f32 %v2014_v55  ;;  %v2016_v10 = vmul.f32 1.442695, %v4101_v26  ;;  %v4105_v36 = vsub.f32 %v3976_v15, %v1923_v47 }
 0x514   :  { %2897 = vpow2.f32 %v2016_v10  ;;  %v2018_v44 = vmul.f32 1.442695, %v4105_v36 }
 0x516   :  { %2899 = vpow2.f32 %v2018_v44 }
 0x51a   :  { %v2894_v22 = vpop.eup %2893 }
 0x51b   :  { %2076 = vadd.xlane.f32.xlu1 %v2894_v22 }
 0x51c   :  { %v2896_v6 = vpop.eup %2895 }
 0x51d   :  { %2078 = vadd.xlane.f32.xlu0 %v2896_v6 }
 0x51e   :  { %v2898_v57 = vpop.eup %2897 }
 0x51f   :  { %2080 = vadd.xlane.f32.xlu1 %v2898_v57 }
 0x520   :  { %v2900_v5 = vpop.eup %2899 }
 0x521   :  { %2082 = vadd.xlane.f32.xlu0 %v2900_v5 }
 0x537   :  { %v2025_v52 = vpop.xlane.xlu1 %2024 }
 0x538   :  { %2901 = vlog2.f32 %v2025_v52 }
 0x53b   :  { %v2021_v56 = vpop.xlane.xlu1 %2020 }
 0x53c   :  { %2903 = vlog2.f32 %v2021_v56 }
 0x53f   :  { %v2027_v53 = vpop.xlane.xlu0 %2026 }
 0x540   :  { %2905 = vlog2.f32 %v2027_v53 }
 0x542   :  { %v2902_v15 = vpop.eup %2901 }
 0x543   :  { %v2089_v45 = vmul.f32 0.6931472, %v2902_v15  ;;  %v2023_v49 = vpop.xlane.xlu0 %2022 }
 0x544   :  { %2907 = vlog2.f32 %v2023_v49 }
 0x545   :  { %v2150_v58 = vsub.f32 %v3981_v51, %v2089_v45 }
 0x546   :  { %v2904_v35 = vpop.eup %2903 }
 0x547   :  { %2182 = vst [vmem:[%s4245_s9 + $0x10] sm:$0xff] %v2150_v58  ;;  %v2085_v9 = vmul.f32 0.6931472, %v2904_v35  ;;  %v2033_v24 = vpop.xlane.xlu1 %2032 }
 0x548   :  { %2909 = vlog2.f32 %v2033_v24 }
 0x549   :  { %v2148_v12 = vsub.f32 %v3985_v11, %v2085_v9  ;;  %v2035_v48 = vpop.xlane.xlu0 %2034 }
 0x54a   :  { %v2906_v33 = vpop.eup %2905  ;;  %2911 = vlog2.f32 %v2035_v48 }
 0x54b   :  { %2180 = vst [vmem:[%s4245_s9] sm:$0xff] %v2148_v12  ;;  %v2091_v41 = vmul.f32 0.6931472, %v2906_v33  ;;  %v2029_v37 = vpop.xlane.xlu1 %2028 }
 0x54c   :  { %2913 = vlog2.f32 %v2029_v37 }
 0x54d   :  { %v2151_v51 = vsub.f32 %v3992_v19, %v2091_v41  ;;  %v2031_v0 = vpop.xlane.xlu0 %2030 }
 0x54e   :  { %v2908_v39 = vpop.eup %2907  ;;  %2915 = vlog2.f32 %v2031_v0 }
 0x54f   :  { %2183 = vst [vmem:[%s4245_s9 + $0x18] sm:$0xff] %v2151_v51  ;;  %v2087_v11 = vmul.f32 0.6931472, %v2908_v39 }
 0x551   :  { %v2149_v2 = vsub.f32 %v3989_v18, %v2087_v11 }
 0x552   :  { %v2910_v16 = vpop.eup %2909 }
 0x553   :  { %2181 = vst [vmem:[%s4245_s9 + $0x8] sm:$0xff] %v2149_v2  ;;  %v2097_v59 = vmul.f32 0.6931472, %v2910_v16 }
 0x554   :  { %v2912_v1 = vpop.eup %2911 }
 0x555   :  { %v2154_v8 = vsub.f32 %v3997_v20, %v2097_v59  ;;  %v2099_v19 = vmul.f32 0.6931472, %v2912_v1 }
 0x556   :  { %v2914_v28 = vpop.eup %2913 }
 0x557   :  { %2186 = vst [vmem:[%s4245_s9 + $0x30] sm:$0xff] %v2154_v8  ;;  %v2155_v54 = vsub.f32 %v4001_v27, %v2099_v19  ;;  %v2093_v55 = vmul.f32 0.6931472, %v2914_v28  ;;  %v2041_v47 = vpop.xlane.xlu1 %2040 }
 0x558   :  { %v2916_v18 = vpop.eup %2915  ;;  %2917 = vlog2.f32 %v2041_v47 }
 0x559   :  { %2187 = vst [vmem:[%s4245_s9 + $0x38] sm:$0xff] %v2155_v54  ;;  %v2152_v10 = vsub.f32 %v4005_v61, %v2093_v55  ;;  %v2095_v44 = vmul.f32 0.6931472, %v2916_v18  ;;  %v2043_v20 = vpop.xlane.xlu0 %2042 }
 0x55a   :  { %2919 = vlog2.f32 %v2043_v20 }
 0x55b   :  { %2184 = vst [vmem:[%s4245_s9 + $0x20] sm:$0xff] %v2152_v10  ;;  %v2153_v22 = vsub.f32 %v4009_v23, %v2095_v44  ;;  %v2037_v27 = vpop.xlane.xlu1 %2036 }
 0x55c   :  { %2921 = vlog2.f32 %v2037_v27 }
 0x55d   :  { %2185 = vst [vmem:[%s4245_s9 + $0x28] sm:$0xff] %v2153_v22  ;;  %v2039_v6 = vpop.xlane.xlu0 %2038 }
 0x55e   :  { %2923 = vlog2.f32 %v2039_v6 }
 0x562   :  { %v2918_v57 = vpop.eup %2917 }
 0x563   :  { %v2105_v5 = vmul.f32 0.6931472, %v2918_v57 }
 0x564   :  { %v2920_v61 = vpop.eup %2919 }
 0x565   :  { %v2158_v52 = vsub.f32 %v4013_v14, %v2105_v5  ;;  %v2107_v56 = vmul.f32 0.6931472, %v2920_v61 }
 0x566   :  { %v2922_v53 = vpop.eup %2921 }
 0x567   :  { %2190 = vst [vmem:[%s4245_s9 + $0x50] sm:$0xff] %v2158_v52  ;;  %v2159_v23 = vsub.f32 %v4017_v31, %v2107_v56  ;;  %v2101_v15 = vmul.f32 0.6931472, %v2922_v53  ;;  %v2049_v45 = vpop.xlane.xlu1 %2048 }
 0x568   :  { %v2924_v49 = vpop.eup %2923  ;;  %2925 = vlog2.f32 %v2049_v45 }
 0x569   :  { %2191 = vst [vmem:[%s4245_s9 + $0x58] sm:$0xff] %v2159_v23  ;;  %v2156_v58 = vsub.f32 %v4021_v4, %v2101_v15  ;;  %v2103_v35 = vmul.f32 0.6931472, %v2924_v49  ;;  %v2051_v14 = vpop.xlane.xlu0 %2050 }
 0x56a   :  { %2927 = vlog2.f32 %v2051_v14 }
 0x56b   :  { %2188 = vst [vmem:[%s4245_s9 + $0x40] sm:$0xff] %v2156_v58  ;;  %v2157_v9 = vsub.f32 %v4025_v40, %v2103_v35  ;;  %v2045_v31 = vpop.xlane.xlu1 %2044 }
 0x56c   :  { %2929 = vlog2.f32 %v2045_v31 }
 0x56d   :  { %2189 = vst [vmem:[%s4245_s9 + $0x48] sm:$0xff] %v2157_v9  ;;  %v2047_v24 = vpop.xlane.xlu0 %2046 }
 0x56e   :  { %2931 = vlog2.f32 %v2047_v24 }
 0x572   :  { %v2926_v12 = vpop.eup %2925 }
 0x573   :  { %v2113_v48 = vmul.f32 0.6931472, %v2926_v12 }
 0x574   :  { %v2928_v4 = vpop.eup %2927 }
 0x575   :  { %v2162_v33 = vsub.f32 %v4029_v38, %v2113_v48  ;;  %v2115_v41 = vmul.f32 0.6931472, %v2928_v4 }
 0x576   :  { %v2930_v37 = vpop.eup %2929 }
 0x577   :  { %2194 = vst [vmem:[%s4245_s9 + $0x70] sm:$0xff] %v2162_v33  ;;  %v2163_v40 = vsub.f32 %v4033_v3, %v2115_v41  ;;  %v2109_v51 = vmul.f32 0.6931472, %v2930_v37  ;;  %v2057_v0 = vpop.xlane.xlu1 %2056 }
 0x578   :  { %v2932_v39 = vpop.eup %2931  ;;  %2933 = vlog2.f32 %v2057_v0 }
 0x579   :  { %2195 = vst [vmem:[%s4245_s9 + $0x78] sm:$0xff] %v2163_v40  ;;  %v2160_v11 = vsub.f32 %v4037_v21, %v2109_v51  ;;  %v2111_v2 = vmul.f32 0.6931472, %v2932_v39  ;;  %v2059_v38 = vpop.xlane.xlu0 %2058 }
 0x57a   :  { %2935 = vlog2.f32 %v2059_v38 }
 0x57b   :  { %2192 = vst [vmem:[%s4245_s9 + $0x60] sm:$0xff] %v2160_v11  ;;  %v2161_v16 = vsub.f32 %v4041_v43, %v2111_v2  ;;  %v2053_v3 = vpop.xlane.xlu1 %2052 }
 0x57c   :  { %2937 = vlog2.f32 %v2053_v3 }
 0x57d   :  { %2193 = vst [vmem:[%s4245_s9 + $0x68] sm:$0xff] %v2161_v16  ;;  %v2055_v59 = vpop.xlane.xlu0 %2054 }
 0x57e   :  { %2939 = vlog2.f32 %v2055_v59 }
 0x582   :  { %v2934_v1 = vpop.eup %2933 }
 0x583   :  { %v2121_v8 = vmul.f32 0.6931472, %v2934_v1 }
 0x584   :  { %v2936_v21 = vpop.eup %2935 }
 0x585   :  { %v2166_v19 = vsub.f32 %v4045_v32, %v2121_v8  ;;  %v2123_v28 = vmul.f32 0.6931472, %v2936_v21 }
 0x586   :  { %v2938_v54 = vpop.eup %2937 }
 0x587   :  { %2198 = vst [vmem:[%s4245_s9 + $0x90] sm:$0xff] %v2166_v19  ;;  %v2167_v43 = vsub.f32 %v4049_v42, %v2123_v28  ;;  %v2117_v55 = vmul.f32 0.6931472, %v2938_v54  ;;  %v2065_v47 = vpop.xlane.xlu1 %2064 }
 0x588   :  { %v2940_v18 = vpop.eup %2939  ;;  %2941 = vlog2.f32 %v2065_v47 }
 0x589   :  { %2199 = vst [vmem:[%s4245_s9 + $0x98] sm:$0xff] %v2167_v43  ;;  %v2164_v10 = vsub.f32 %v4053_v62, %v2117_v55  ;;  %v2119_v44 = vmul.f32 0.6931472, %v2940_v18  ;;  %v2067_v32 = vpop.xlane.xlu0 %2066 }
 0x58a   :  { %2943 = vlog2.f32 %v2067_v32 }
 0x58b   :  { %2196 = vst [vmem:[%s4245_s9 + $0x80] sm:$0xff] %v2164_v10  ;;  %v2165_v20 = vsub.f32 %v4057_v17, %v2119_v44  ;;  %v2061_v42 = vpop.xlane.xlu1 %2060 }
 0x58c   :  { %2945 = vlog2.f32 %v2061_v42 }
 0x58d   :  { %2197 = vst [vmem:[%s4245_s9 + $0x88] sm:$0xff] %v2165_v20  ;;  %v2063_v22 = vpop.xlane.xlu0 %2062 }
 0x58e   :  { %2947 = vlog2.f32 %v2063_v22 }
 0x592   :  { %v2942_v27 = vpop.eup %2941 }
 0x593   :  { %v2129_v6 = vmul.f32 0.6931472, %v2942_v27 }
 0x594   :  { %v2944_v62 = vpop.eup %2943 }
 0x595   :  { %v2170_v57 = vsub.f32 %v4061_v46, %v2129_v6  ;;  %v2131_v5 = vmul.f32 0.6931472, %v2944_v62 }
 0x596   :  { %v2946_v61 = vpop.eup %2945 }
 0x597   :  { %2202 = vst [vmem:[%s4245_s9 + $0xb0] sm:$0xff] %v2170_v57  ;;  %v2171_v17 = vsub.f32 %v4065_v34, %v2131_v5  ;;  %v2125_v52 = vmul.f32 0.6931472, %v2946_v61  ;;  %v2073_v56 = vpop.xlane.xlu1 %2072 }
 0x598   :  { %v2948_v53 = vpop.eup %2947  ;;  %2949 = vlog2.f32 %v2073_v56 }
 0x599   :  { %2203 = vst [vmem:[%s4245_s9 + $0xb8] sm:$0xff] %v2171_v17  ;;  %v2168_v23 = vsub.f32 %v4069_v29, %v2125_v52  ;;  %v2127_v15 = vmul.f32 0.6931472, %v2948_v53  ;;  %v2075_v46 = vpop.xlane.xlu0 %2074 }
 0x59a   :  { %2951 = vlog2.f32 %v2075_v46 }
 0x59b   :  { %2200 = vst [vmem:[%s4245_s9 + $0xa0] sm:$0xff] %v2168_v23  ;;  %v2169_v45 = vsub.f32 %v4073_v63, %v2127_v15  ;;  %v2069_v34 = vpop.xlane.xlu1 %2068 }
 0x59c   :  { %2953 = vlog2.f32 %v2069_v34 }
 0x59d   :  { %2201 = vst [vmem:[%s4245_s9 + $0xa8] sm:$0xff] %v2169_v45  ;;  %v2071_v49 = vpop.xlane.xlu0 %2070 }
 0x59e   :  { %2955 = vlog2.f32 %v2071_v49 }
 0x5a2   :  { %v2950_v58 = vpop.eup %2949 }
 0x5a3   :  { %v2137_v35 = vmul.f32 0.6931472, %v2950_v58 }
 0x5a4   :  { %v2952_v29 = vpop.eup %2951 }
 0x5a5   :  { %v2174_v14 = vsub.f32 %v4077_v60, %v2137_v35  ;;  %v2139_v9 = vmul.f32 0.6931472, %v2952_v29 }
 0x5a6   :  { %v2954_v31 = vpop.eup %2953 }
 0x5a7   :  { %2206 = vst [vmem:[%s4245_s9 + $0xd0] sm:$0xff] %v2174_v14  ;;  %v2175_v63 = vsub.f32 %v4081_v30, %v2139_v9  ;;  %v2133_v24 = vmul.f32 0.6931472, %v2954_v31 }
 0x5a8   :  { %v2956_v12 = vpop.eup %2955  ;;  %v2077_v48 = vpop.xlane.xlu1 %2076 }
 0x5a9   :  { %2207 = vst [vmem:[%s4245_s9 + $0xd8] sm:$0xff] %v2175_v63  ;;  %v2172_v4 = vsub.f32 %v4085_v7, %v2133_v24  ;;  %v2135_v33 = vmul.f32 0.6931472, %v2956_v12  ;;  %2957 = vlog2.f32 %v2077_v48 }
 0x5aa   :  { %v2079_v60 = vpop.xlane.xlu0 %2078 }
 0x5ab   :  { %2204 = vst [vmem:[%s4245_s9 + $0xc0] sm:$0xff] %v2172_v4  ;;  %v2173_v41 = vsub.f32 %v4089_v25, %v2135_v33  ;;  %2959 = vlog2.f32 %v2079_v60 }
 0x5ac   :  { %v2081_v30 = vpop.xlane.xlu1 %2080 }
 0x5ad   :  { %2205 = vst [vmem:[%s4245_s9 + $0xc8] sm:$0xff] %v2173_v41  ;;  %2961 = vlog2.f32 %v2081_v30 }
 0x5ae   :  { %v2083_v37 = vpop.xlane.xlu0 %2082 }
 0x5af   :  { %2963 = vlog2.f32 %v2083_v37 }
 0x5b3   :  { %v2958_v40 = vpop.eup %2957 }
 0x5b4   :  { %v2141_v7 = vmul.f32 0.6931472, %v2958_v40 }
 0x5b5   :  { %v2960_v51 = vpop.eup %2959 }
 0x5b6   :  { %v2176_v0 = vsub.f32 %v4093_v13, %v2141_v7  ;;  %v2143_v39 = vmul.f32 0.6931472, %v2960_v51 }
 0x5b7   :  { %v2962_v11 = vpop.eup %2961 }
 0x5b8   :  { %2208 = vst [vmem:[%s4245_s9 + $0xe0] sm:$0xff] %v2176_v0  ;;  %v2177_v25 = vsub.f32 %v4097_v50, %v2143_v39  ;;  %v2145_v2 = vmul.f32 0.6931472, %v2962_v11 }
 0x5b9   :  { %v2964_v38 = vpop.eup %2963 }
 0x5ba   :  { %2209 = vst [vmem:[%s4245_s9 + $0xe8] sm:$0xff] %v2177_v25  ;;  %v2178_v16 = vsub.f32 %v4101_v26, %v2145_v2  ;;  %v2147_v3 = vmul.f32 0.6931472, %v2964_v38 }
 0x5bc   :  { %2210 = vst [vmem:[%s4245_s9 + $0xf0] sm:$0xff] %v2178_v16  ;;  %v2179_v13 = vsub.f32 %v4105_v36, %v2147_v3 }
 0x5be   :  { %2211 = vst [vmem:[%s4245_s9 + $0xf8] sm:$0xff] %v2179_v13 }

</bundles_post_ra>
